<compile_context>
chip_gen: v5e
topology: v5e:2x2
jax: 0.10.0
libtpu: 0.0.40
codegen_flags: <defaults>
</compile_context>

<pallas_src>
import math

import jax
import jax.numpy as jnp
from jax import lax
from jax.experimental import pallas as pl
from jax.experimental.pallas import tpu as pltpu

KSIZE = 5
PAD = 2


def _lenet_kernel(x_ref, a1_ref, b1_ref, a2_ref, b2_ref, w3_ref, b3_ref,
                  w4_ref, b4_ref, out_ref):
    f32 = jnp.float32
    bf16 = jnp.bfloat16
    H1 = b1_ref.shape[0]          # 20 * L // 2
    H2 = b2_ref.shape[0]          # 50 * L // 4

    # conv1 + maxpool1 (dropout1 = identity in eval mode).
    # x arrives as a natural-layout (B, L) bf16 tile; contract over L in NT
    # form so the (B,L)->(L,B) relayout happens inside the matmul (idle XLU).
    # a1 stacks the even/odd pooled-row maps -> one MXU matmul per stage.
    y1 = lax.dot_general(a1_ref[...], x_ref[...],
                         dimension_numbers=(((1,), (1,)), ((), ())),
                         preferred_element_type=f32)            # (2*H1, B)
    p1 = jnp.maximum(y1[:H1], y1[H1:]) + b1_ref[...]            # (H1, B) f32

    # conv2 + maxpool2 (dropout2 = identity), same stacked trick; K = H1.
    y2 = jnp.dot(a2_ref[...], p1.astype(bf16),
                 preferred_element_type=f32)                    # (2*H2, B)
    p2 = jnp.maximum(y2[:H2], y2[H2:]) + b2_ref[...]            # (H2, B) f32

    # flatten is implicit: p2 rows are already in PyTorch (c*L4 + m) order.
    # dense3 + relu (dropout3 = identity).  Single K = 50*L/4 matmul.
    h3 = jnp.maximum(
        jnp.dot(w3_ref[...], p2.astype(bf16), preferred_element_type=f32)
        + b3_ref[...], 0.0)                                     # (500, B) f32

    # final1 + sigmoid (numerically stable form, no overflow for any z).
    z = jnp.dot(w4_ref[...], h3.astype(bf16),
                preferred_element_type=f32) + b4_ref[...]       # (1, B)
    ez = jnp.exp(-jnp.abs(z))
    out_ref[...] = jnp.where(z >= 0.0, 1.0 / (1.0 + ez), ez / (1.0 + ez))


def _conv1d_as_dense(w, L):
    """Dense matrix A with A[co*L + l, ci*L + j] == w[co, ci, j - l + PAD]
    (zero outside the kernel window) == Conv1d(k=5, padding=2) on a flattened
    per-sample (ci, L) activation."""
    c_out, c_in, k = w.shape
    l = jnp.arange(L)
    j = jnp.arange(L)
    tap = j[None, :] - l[:, None] + PAD                      # (L, L)
    valid = (tap >= 0) & (tap < k)
    tap = jnp.clip(tap, 0, k - 1)
    blocks = w[:, :, tap] * valid[None, None].astype(w.dtype)    # (c_out, c_in, L, L)
    return jnp.transpose(blocks, (0, 2, 1, 3)).reshape(c_out * L, c_in * L)


def _fold_maxpool_stacked(A, b, c_out, L):
    """Stack the even/odd output rows of a dense conv map (== maxpool(2,2)
    candidates) vertically, and pool the per-channel bias to the pooled
    feature order.  The kernel pools with maximum(y[:H], y[H:])."""
    rows = jnp.arange(c_out * L).reshape(c_out, L)
    a_even = A[rows[:, 0::2].reshape(-1)]
    a_odd = A[rows[:, 1::2].reshape(-1)]
    b_pool = jnp.repeat(b, L // 2)[:, None]
    return jnp.concatenate([a_even, a_odd], axis=0), b_pool


def init_params(key, L):
    """Deterministic init mimicking PyTorch default (uniform +-1/sqrt(fan_in))."""
    L4 = L // 4

    def uni(k, shape, fan_in):
        bound = 1.0 / math.sqrt(fan_in)
        return jax.random.uniform(k, shape, jnp.float32, -bound, bound)

    ks = jax.random.split(key, 8)
    return {
        "w1": uni(ks[0], (20, 1, KSIZE), 1 * KSIZE),
        "b1": uni(ks[1], (20,), 1 * KSIZE),
        "w2": uni(ks[2], (50, 20, KSIZE), 20 * KSIZE),
        "b2": uni(ks[3], (50,), 20 * KSIZE),
        "w3": uni(ks[4], (500, 50 * L4), 50 * L4),
        "b3": uni(ks[5], (500,), 50 * L4),
        "w4": uni(ks[6], (1, 500), 500),
        "b4": uni(ks[7], (1,), 500),
    }


def lenet_pallas(x, params, *, batch_tile=512):
    N, C, L = x.shape
    assert C == 1 and L % 4 == 0
    bf16 = jnp.bfloat16

    # Batch tile: multiple of 128 lanes, capped so the "parallel" grid axis
    # keeps >= 2 tiles when N allows it (v7x has 2 TensorCores per chip).
    n_req = pl.cdiv(N, 128)
    b_cap = 128 * max(1, pl.cdiv(n_req, 2))
    B = 128 * max(1, min(batch_tile, b_cap) // 128)
    n_tiles = pl.cdiv(N, B)
    Ntot = n_tiles * B

    # ---- glue: fold conv+pool into small dense maps (tiny static weights) ----
    a1f = _conv1d_as_dense(params["w1"], L)                      # (20L, L)
    a1, b1p = _fold_maxpool_stacked(a1f, params["b1"], 20, L)    # (20L, L), (10L, 1)
    a2f = _conv1d_as_dense(params["w2"], L // 2)                 # (25L, 10L)
    a2, b2p = _fold_maxpool_stacked(a2f, params["b2"], 50, L // 2)
    a1 = a1.astype(bf16)
    a2 = a2.astype(bf16)
    w3 = params["w3"].astype(bf16)
    b3 = params["b3"][:, None]
    w4 = params["w4"].astype(bf16)
    b4 = params["b4"][:, None]

    # Natural (N, L) layout, bf16, pad only the remainder batch tile.
    x2d = x.reshape(N, L).astype(bf16)
    if Ntot != N:
        x2d = jnp.pad(x2d, ((0, Ntot - N), (0, 0)))

    def full(arr):                    # whole (small) weight resident every step
        return pl.BlockSpec(arr.shape, lambda n: (0, 0))

    out = pl.pallas_call(
        _lenet_kernel,
        out_shape=jax.ShapeDtypeStruct((1, Ntot), jnp.float32),
        grid=(n_tiles,),
        in_specs=[
            pl.BlockSpec((B, L), lambda n: (n, 0)),   # B samples per grid step
            full(a1), full(b1p),
            full(a2), full(b2p),
            full(w3), full(b3), full(w4), full(b4),
        ],
        out_specs=pl.BlockSpec((1, B), lambda n: (0, n)),  # lane-dense output row
        compiler_params=pltpu.CompilerParams(dimension_semantics=("parallel",)),
    )(x2d, a1, b1p, a2, b2p, w3, b3, w4, b4)
    return out[0, :N, None]                                    # (N, 1)


def lenet_ref(x, params):
    """Plain-JAX f32 reference of the PyTorch forward (eval mode)."""
    N = x.shape[0]
    dn = ("NCH", "OIH", "NCH")
    h = lax.conv_general_dilated(x, params["w1"], (1,), [(PAD, PAD)],
                                 dimension_numbers=dn) + params["b1"][None, :, None]
    h = h.reshape(N, 20, -1, 2).max(axis=-1)
    h = lax.conv_general_dilated(h, params["w2"], (1,), [(PAD, PAD)],
                                 dimension_numbers=dn) + params["b2"][None, :, None]
    h = h.reshape(N, 50, -1, 2).max(axis=-1)
    h = h.reshape(N, -1)
    h = jnp.maximum(h @ params["w3"].T + params["b3"], 0.0)
    return jax.nn.sigmoid(h @ params["w4"].T + params["b4"])


if __name__ == "__main__":
    # TODO(synk): nn.Dropout is stochastic only in train mode; eval semantics
    # are identity, which is what the kernel implements.  self.final2 is unused
    # in forward() and therefore omitted.
    # Tolerance vs the f32 reference is loosened to 2e-2 because the kernel
    # feeds bf16 operands to the MXU (f32 accumulation), per the perf review.
    key = jax.random.PRNGKey(0)
    kx1, kx2, kp = jax.random.split(key, 3)

    L = 16        # input_dim = 16  ->  dense3 in_features = (16 // 4) * 50 = 200
    params = init_params(kp, L)

    # Case 1: tiny batch (single grid tile, remainder-padded).
    x_small = jax.random.normal(kx1, (2, 1, L), jnp.float32)
    out_s = jax.block_until_ready(lenet_pallas(x_small, params))
    ref_s = jax.block_until_ready(lenet_ref(x_small, params))
    assert out_s.shape == (2, 1), out_s.shape
    if not jnp.allclose(out_s, ref_s, atol=2e-2, rtol=2e-2):
        raise AssertionError(f"small-batch mismatch: pallas={out_s}, ref={ref_s}")

    # Case 2: multi-tile grid (exercises batch capping, 2 parallel tiles and
    # remainder padding).
    x_big = jax.random.normal(kx2, (260, 1, L), jnp.float32)
    out_b = jax.block_until_ready(lenet_pallas(x_big, params))
    ref_b = jax.block_until_ready(lenet_ref(x_big, params))
    assert out_b.shape == (260, 1), out_b.shape
    if not jnp.allclose(out_b, ref_b, atol=2e-2, rtol=2e-2):
        err = jnp.max(jnp.abs(out_b - ref_b))
        raise AssertionError(f"large-batch mismatch: max abs err = {err}")

    print("KERNEL_OK")
</pallas_src>

<mosaic_0001>
module attributes {stable_mosaic.version = 11 : i64} {
  func.func @_lenet_kernel(%arg0: i32, %arg1: memref<128x16xbf16, #tpu.memory_space<vmem>>, %arg2: memref<320x16xbf16, #tpu.memory_space<vmem>>, %arg3: memref<160x1xf32, #tpu.memory_space<vmem>>, %arg4: memref<400x160xbf16, #tpu.memory_space<vmem>>, %arg5: memref<200x1xf32, #tpu.memory_space<vmem>>, %arg6: memref<500x200xbf16, #tpu.memory_space<vmem>>, %arg7: memref<500x1xf32, #tpu.memory_space<vmem>>, %arg8: memref<1x500xbf16, #tpu.memory_space<vmem>>, %arg9: memref<1x1xf32, #tpu.memory_space<vmem>>, %arg10: memref<1x128xf32, #tpu.memory_space<vmem>>) attributes {dimension_semantics = [#tpu.dimension_semantics<parallel>], iteration_bounds = array<i64: 1>, scalar_prefetch = 0 : i64, scratch_operands = 0 : i64, tpu.core_type = #tpu.core_type<tc>, window_params = [{transform_indices = @transform_0, window_bounds = array<i64: 128, 16>}, {pipeline_mode = #tpu.pipeline_mode<synchronous>, transform_indices = @transform_1, window_bounds = array<i64: 320, 16>}, {pipeline_mode = #tpu.pipeline_mode<synchronous>, transform_indices = @transform_2, window_bounds = array<i64: 160, 1>}, {pipeline_mode = #tpu.pipeline_mode<synchronous>, transform_indices = @transform_3, window_bounds = array<i64: 400, 160>}, {pipeline_mode = #tpu.pipeline_mode<synchronous>, transform_indices = @transform_4, window_bounds = array<i64: 200, 1>}, {pipeline_mode = #tpu.pipeline_mode<synchronous>, transform_indices = @transform_5, window_bounds = array<i64: 500, 200>}, {pipeline_mode = #tpu.pipeline_mode<synchronous>, transform_indices = @transform_6, window_bounds = array<i64: 500, 1>}, {pipeline_mode = #tpu.pipeline_mode<synchronous>, transform_indices = @transform_7, window_bounds = array<i64: 1, 500>}, {pipeline_mode = #tpu.pipeline_mode<synchronous>, transform_indices = @transform_8, window_bounds = array<i64: 1, 1>}, {transform_indices = @transform_9, window_bounds = array<i64: 1, 128>}]} {
    %c0 = arith.constant 0 : index
    %c0_0 = arith.constant 0 : index
    %0 = vector.load %arg2[%c0, %c0_0] : memref<320x16xbf16, #tpu.memory_space<vmem>>, vector<320x16xbf16>
    %c0_1 = arith.constant 0 : index
    %c0_2 = arith.constant 0 : index
    %1 = vector.load %arg1[%c0_1, %c0_2] : memref<128x16xbf16, #tpu.memory_space<vmem>>, vector<128x16xbf16>
    %cst = arith.constant dense<0.000000e+00> : vector<320x128xf32>
    %2 = tpu.matmul %0, %1, %cst {dimension_numbers = #tpu.dot_dimension_numbers<[1], [1], [0], [0], [0, 0, 1, 0], [], []>} : vector<320x16xbf16>, vector<128x16xbf16>, vector<320x128xf32> -> vector<320x128xf32>
    %3 = vector.extract_strided_slice %2 {offsets = [0, 0], sizes = [160, 128], strides = [1, 1]} : vector<320x128xf32> to vector<160x128xf32>
    %4 = vector.extract_strided_slice %2 {offsets = [160, 0], sizes = [160, 128], strides = [1, 1]} : vector<320x128xf32> to vector<160x128xf32>
    %5 = arith.maximumf %3, %4 : vector<160x128xf32>
    %c0_3 = arith.constant 0 : index
    %c0_4 = arith.constant 0 : index
    %6 = vector.load %arg3[%c0_3, %c0_4] : memref<160x1xf32, #tpu.memory_space<vmem>>, vector<160x1xf32>
    %7 = vector.broadcast %6 : vector<160x1xf32> to vector<160x128xf32>
    %8 = arith.addf %5, %7 : vector<160x128xf32>
    %c0_5 = arith.constant 0 : index
    %c0_6 = arith.constant 0 : index
    %9 = vector.load %arg4[%c0_5, %c0_6] : memref<400x160xbf16, #tpu.memory_space<vmem>>, vector<400x160xbf16>
    %10 = arith.truncf %8 : vector<160x128xf32> to vector<160x128xbf16>
    %cst_7 = arith.constant dense<0.000000e+00> : vector<400x128xf32>
    %11 = tpu.matmul %9, %10, %cst_7 {dimension_numbers = #tpu.dot_dimension_numbers<[1], [0], [0], [1], [0, 0, 1, 1], [], []>} : vector<400x160xbf16>, vector<160x128xbf16>, vector<400x128xf32> -> vector<400x128xf32>
    %12 = vector.extract_strided_slice %11 {offsets = [0, 0], sizes = [200, 128], strides = [1, 1]} : vector<400x128xf32> to vector<200x128xf32>
    %13 = vector.extract_strided_slice %11 {offsets = [200, 0], sizes = [200, 128], strides = [1, 1]} : vector<400x128xf32> to vector<200x128xf32>
    %14 = arith.maximumf %12, %13 : vector<200x128xf32>
    %c0_8 = arith.constant 0 : index
    %c0_9 = arith.constant 0 : index
    %15 = vector.load %arg5[%c0_8, %c0_9] : memref<200x1xf32, #tpu.memory_space<vmem>>, vector<200x1xf32>
    %16 = vector.broadcast %15 : vector<200x1xf32> to vector<200x128xf32>
    %17 = arith.addf %14, %16 : vector<200x128xf32>
    %c0_10 = arith.constant 0 : index
    %c0_11 = arith.constant 0 : index
    %18 = vector.load %arg6[%c0_10, %c0_11] : memref<500x200xbf16, #tpu.memory_space<vmem>>, vector<500x200xbf16>
    %19 = arith.truncf %17 : vector<200x128xf32> to vector<200x128xbf16>
    %cst_12 = arith.constant dense<0.000000e+00> : vector<500x128xf32>
    %20 = tpu.matmul %18, %19, %cst_12 {dimension_numbers = #tpu.dot_dimension_numbers<[1], [0], [0], [1], [0, 0, 1, 1], [], []>} : vector<500x200xbf16>, vector<200x128xbf16>, vector<500x128xf32> -> vector<500x128xf32>
    %c0_13 = arith.constant 0 : index
    %c0_14 = arith.constant 0 : index
    %21 = vector.load %arg7[%c0_13, %c0_14] : memref<500x1xf32, #tpu.memory_space<vmem>>, vector<500x1xf32>
    %22 = vector.broadcast %21 : vector<500x1xf32> to vector<500x128xf32>
    %23 = arith.addf %20, %22 : vector<500x128xf32>
    %cst_15 = arith.constant 0.000000e+00 : f32
    %24 = vector.broadcast %cst_15 : f32 to vector<500x128xf32>
    %25 = arith.maximumf %23, %24 : vector<500x128xf32>
    %c0_16 = arith.constant 0 : index
    %c0_17 = arith.constant 0 : index
    %26 = vector.load %arg8[%c0_16, %c0_17] : memref<1x500xbf16, #tpu.memory_space<vmem>>, vector<1x500xbf16>
    %27 = arith.truncf %25 : vector<500x128xf32> to vector<500x128xbf16>
    %cst_18 = arith.constant dense<0.000000e+00> : vector<1x128xf32>
    %28 = tpu.matmul %26, %27, %cst_18 {dimension_numbers = #tpu.dot_dimension_numbers<[1], [0], [0], [1], [0, 0, 1, 1], [], []>} : vector<1x500xbf16>, vector<500x128xbf16>, vector<1x128xf32> -> vector<1x128xf32>
    %c0_19 = arith.constant 0 : index
    %c0_20 = arith.constant 0 : index
    %29 = vector.load %arg9[%c0_19, %c0_20] : memref<1x1xf32, #tpu.memory_space<vmem>>, vector<1x1xf32>
    %30 = vector.broadcast %29 : vector<1x1xf32> to vector<1x128xf32>
    %31 = arith.addf %28, %30 : vector<1x128xf32>
    %32 = math.absf %31 : vector<1x128xf32>
    %cst_21 = arith.constant 0.000000e+00 : f32
    %33 = vector.broadcast %cst_21 : f32 to vector<1x128xf32>
    %34 = arith.subf %33, %32 : vector<1x128xf32>
    %35 = math.exp %34 : vector<1x128xf32>
    %cst_22 = arith.constant 0.000000e+00 : f32
    %36 = vector.broadcast %cst_22 : f32 to vector<1x128xf32>
    %37 = arith.cmpf oge, %31, %36 : vector<1x128xf32>
    %cst_23 = arith.constant 1.000000e+00 : f32
    %38 = vector.broadcast %cst_23 : f32 to vector<1x128xf32>
    %39 = arith.addf %38, %35 : vector<1x128xf32>
    %cst_24 = arith.constant 1.000000e+00 : f32
    %40 = vector.broadcast %cst_24 : f32 to vector<1x128xf32>
    %41 = arith.divf %40, %39 : vector<1x128xf32>
    %cst_25 = arith.constant 1.000000e+00 : f32
    %42 = vector.broadcast %cst_25 : f32 to vector<1x128xf32>
    %43 = arith.addf %42, %35 : vector<1x128xf32>
    %44 = arith.divf %35, %43 : vector<1x128xf32>
    %45 = arith.select %37, %41, %44 : vector<1x128xi1>, vector<1x128xf32>
    %c0_26 = arith.constant 0 : index
    %c0_27 = arith.constant 0 : index
    %46 = vector.load %arg10[%c0_26, %c0_27] : memref<1x128xf32, #tpu.memory_space<vmem>>, vector<1x128xf32>
    tpu.vector_store %arg10[%c0_26, %c0_27], %45 {strides = array<i32>} : memref<1x128xf32, #tpu.memory_space<vmem>>, vector<1x128xf32>,
    return
  }
  func.func @transform_0(%arg0: i32) -> (i32, i32) {
    %c0_i32 = arith.constant 0 : i32
    %c0_i32_0 = arith.constant 0 : i32
    return %arg0, %c0_i32 : i32, i32
  }
  func.func @transform_1(%arg0: i32) -> (i32, i32) {
    %c0_i32 = arith.constant 0 : i32
    %c0_i32_0 = arith.constant 0 : i32
    %c0_i32_1 = arith.constant 0 : i32
    return %c0_i32, %c0_i32_0 : i32, i32
  }
  func.func @transform_2(%arg0: i32) -> (i32, i32) {
    %c0_i32 = arith.constant 0 : i32
    %c0_i32_0 = arith.constant 0 : i32
    %c0_i32_1 = arith.constant 0 : i32
    return %c0_i32, %c0_i32_0 : i32, i32
  }
  func.func @transform_3(%arg0: i32) -> (i32, i32) {
    %c0_i32 = arith.constant 0 : i32
    %c0_i32_0 = arith.constant 0 : i32
    %c0_i32_1 = arith.constant 0 : i32
    return %c0_i32, %c0_i32_0 : i32, i32
  }
  func.func @transform_4(%arg0: i32) -> (i32, i32) {
    %c0_i32 = arith.constant 0 : i32
    %c0_i32_0 = arith.constant 0 : i32
    %c0_i32_1 = arith.constant 0 : i32
    return %c0_i32, %c0_i32_0 : i32, i32
  }
  func.func @transform_5(%arg0: i32) -> (i32, i32) {
    %c0_i32 = arith.constant 0 : i32
    %c0_i32_0 = arith.constant 0 : i32
    %c0_i32_1 = arith.constant 0 : i32
    return %c0_i32, %c0_i32_0 : i32, i32
  }
  func.func @transform_6(%arg0: i32) -> (i32, i32) {
    %c0_i32 = arith.constant 0 : i32
    %c0_i32_0 = arith.constant 0 : i32
    %c0_i32_1 = arith.constant 0 : i32
    return %c0_i32, %c0_i32_0 : i32, i32
  }
  func.func @transform_7(%arg0: i32) -> (i32, i32) {
    %c0_i32 = arith.constant 0 : i32
    %c0_i32_0 = arith.constant 0 : i32
    %c0_i32_1 = arith.constant 0 : i32
    return %c0_i32, %c0_i32_0 : i32, i32
  }
  func.func @transform_8(%arg0: i32) -> (i32, i32) {
    %c0_i32 = arith.constant 0 : i32
    %c0_i32_0 = arith.constant 0 : i32
    %c0_i32_1 = arith.constant 0 : i32
    return %c0_i32, %c0_i32_0 : i32, i32
  }
  func.func @transform_9(%arg0: i32) -> (i32, i32) {
    %c0_i32 = arith.constant 0 : i32
    %c0_i32_0 = arith.constant 0 : i32
    return %c0_i32, %arg0 : i32, i32
  }
}

</mosaic_0001>

<bundles_post_ra>
// kernel: tpu_custom_call.1
= control target key start
LH: loop header
LB: loop body
LE: loop exit
PB: predicated region body
PF: predicated region fallthrough
CT: control target
= control target key end

     0   :  { %s5420_s0 = inlined_call_operand.vmem [shape: bf16[128,16], index: 0, kind: input, shape index: {}]   ;;  %s5421_s1 = inlined_call_operand.vmem [shape: bf16[320,16], index: 1, kind: input, shape index: {}]   ;;  %s5422_s2 = inlined_call_operand.vmem [shape: f32[160,1], index: 2, kind: input, shape index: {}]   ;;  %s5423_s3 = inlined_call_operand.vmem [shape: bf16[400,160], index: 3, kind: input, shape index: {}]   ;;  %s5424_s4 = inlined_call_operand.vmem [shape: f32[200,1], index: 4, kind: input, shape index: {}]   ;;  %s5425_s5 = inlined_call_operand.vmem [shape: bf16[500,200], index: 5, kind: input, shape index: {}]   ;;  %s5426_s6 = inlined_call_operand.vmem [shape: f32[500,1], index: 6, kind: input, shape index: {}]   ;;  %s5427_s7 = inlined_call_operand.vmem [shape: bf16[1,500], index: 7, kind: input, shape index: {}]   ;;  %s5428_s8 = inlined_call_operand.<no memory space> [shape: f32[1,1], index: 8, kind: input, shape index: {}]   ;;  %s5429_s9 = inlined_call_operand.hbm [shape: f32[1,128], index: 9, kind: output, shape index: {}]  }
   0x1   :  { %v14_v0 = vstv %s5428_s8 }
   0x2   :  { %15 = vst [vmem:[#allocation2] sm:$0x1] %v14_v0 }
   0x3   :  { %v3467_v1 = vld [vmem:[%s5420_s0 + $0x38] sm:$0xff]  ;;  %vm232_vm0 = vcmask 130048  }
   0x4   :  { %16 = vsyncpa [#allocation4], 0  ;;  %v315_v2 = vsel %vm232_vm0, %v3467_v1, 0  ;;  %v3466_v3 = vld [vmem:[%s5420_s0 + $0x30] sm:$0xff]  ;;  %v3465_v5 = vld [vmem:[%s5420_s0 + $0x28] sm:$0xff]  ;;  %v3629_v9 = vmov 0  }
   0x5   :  { %317 = vmatpush.bf16.xpose.msra.mxu0 %v315_v2  ;;  %v312_v4 = vsel %vm232_vm0, %v3466_v3, 0  ;;  %v309_v6 = vsel %vm232_vm0, %v3465_v5, 0  ;;  %v460_v7 = vld [vmem:[%s5422_s2 + $0x70] sm:$0xff]  ;;  %v3464_v8 = vld [vmem:[%s5420_s0 + $0x20] sm:$0xff]  ;;  %3596 = vset.pattern.permute.xlu0 %v3629_v9  ;;  %v3463_v11 = vld [vmem:[%s5420_s0 + $0x18] sm:$0xff]  ;;  %vm871_vm1 = vcmask 261120  }
   0x6   :  { %3597 = vset.pattern.permute.xlu1 %v3629_v9  ;;  %538 = vperm.xlu0 %3596, %v460_v7   ;;  %v306_v10 = vsel %vm232_vm0, %v3464_v8, 0  ;;  %v303_v12 = vsel %vm232_vm0, %v3463_v11, 0  ;;  %v461_v13 = vld [vmem:[%s5422_s2 + $0x78] sm:$0xff]  ;;  %v458_v14 = vld [vmem:[%s5422_s2 + $0x60] sm:$0xff]  ;;  %v3462_v15 = vld [vmem:[%s5420_s0 + $0x10] sm:$0xff]  ;;  %vm2251_vm2 = vcmask 1043456  }
   0x7   :  { %3598 = vset.pattern.permute.xlu2 %v3629_v9  ;;  %528 = vperm.xlu1 %3597, %v458_v14   ;;  %v300_v16 = vsel %vm232_vm0, %v3462_v15, 0  ;;  %v454_v17 = vld [vmem:[%s5422_s2 + $0x40] sm:$0xff]  ;;  %v459_v18 = vld [vmem:[%s5422_s2 + $0x68] sm:$0xff]  ;;  %v453_v21 = vld [vmem:[%s5422_s2 + $0x38] sm:$0xff]  ;;  %vm2154_vm3 = vcmask 588800   ;;  %vm2706_vm4 = vcmask 1041408  }
   0x8   :  { %v3461_v19 = vld [vmem:[%s5420_s0 + $0x8] sm:$0xff]  ;;  %v456_v23 = vld [vmem:[%s5422_s2 + $0x50] sm:$0xff]  ;;  %v3460_v24 = vld [vmem:[%s5420_s0] sm:$0xff]  ;;  %vm2703_vm5 = vcmask 949248  }
   0x9   :  { %v297_v20 = vsel %vm232_vm0, %v3461_v19, 0  ;;  %v455_v22 = vld [vmem:[%s5422_s2 + $0x48] sm:$0xff]  ;;  %518 = vperm.xlu2 %3598, %v456_v23   ;;  %v294_v25 = vsel %vm232_vm0, %v3460_v24, 0  ;;  %v448_v26 = vld [vmem:[%s5422_s2 + $0x10] sm:$0xff]  ;;  %v450_v27 = vld [vmem:[%s5422_s2 + $0x20] sm:$0xff] }
   0xa   :  { %v3440_v28 = vld [vmem:[%s5421_s1] sm:$0xff]  ;;  %v447_v29 = vld [vmem:[%s5422_s2 + $0x8] sm:$0xff]  ;;  %v457_v30 = vld [vmem:[%s5422_s2 + $0x58] sm:$0xff] }
   0xb   :  { %v449_v31 = vld [vmem:[%s5422_s2 + $0x18] sm:$0xff]  ;;  %v462_v32 = vld [vmem:[%s5422_s2 + $0x80] sm:$0xff]  ;;  %v452_v33 = vld [vmem:[%s5422_s2 + $0x30] sm:$0xff] }
   0xc   :  { %v464_v34 = vld [vmem:[%s5422_s2 + $0x90] sm:$0xff]  ;;  %v3441_v35 = vld [vmem:[%s5421_s1 + $0x8] sm:$0xff]  ;;  %v1255_v36 = vld [vmem:[%s5424_s4 + $0x78] sm:$0xff] }
   0xd   :  { %318 = vmatpush.bf16.xpose.msra.mxu0 %v312_v4  ;;  %v451_v37 = vld [vmem:[%s5422_s2 + $0x28] sm:$0xff]  ;;  %v1250_v39 = vld [vmem:[%s5424_s4 + $0x50] sm:$0xff]  ;;  %v446_v40 = vld [vmem:[%s5422_s2] sm:$0xff] }
   0xe   :  { %543 = vperm.xlu0 %3596, %v461_v13   ;;  %v463_v38 = vld [vmem:[%s5422_s2 + $0x88] sm:$0xff]  ;;  %v1252_v41 = vld [vmem:[%s5424_s4 + $0x60] sm:$0xff]  ;;  %v3442_v42 = vld [vmem:[%s5421_s1 + $0x10] sm:$0xff] }
   0xf   :  { %533 = vperm.xlu1 %3597, %v459_v18   ;;  %v1249_v43 = vld [vmem:[%s5424_s4 + $0x48] sm:$0xff]  ;;  %v1251_v44 = vld [vmem:[%s5424_s4 + $0x58] sm:$0xff]  ;;  %v1244_v46 = vld [vmem:[%s5424_s4 + $0x20] sm:$0xff] }
  0x10   :  { %v465_v45 = vld [vmem:[%s5422_s2 + $0x98] sm:$0xff]  ;;  %v1254_v47 = vld [vmem:[%s5424_s4 + $0x70] sm:$0xff]  ;;  %v1245_v51 = vld [vmem:[%s5424_s4 + $0x28] sm:$0xff] }
  0x11   :  { %523 = vperm.xlu2 %3598, %v457_v30   ;;  %v1246_v48 = vld [vmem:[%s5424_s4 + $0x30] sm:$0xff]  ;;  %v3443_v49 = vld [vmem:[%s5421_s1 + $0x18] sm:$0xff]  ;;  %v1253_v52 = vld [vmem:[%s5424_s4 + $0x68] sm:$0xff] }
  0x12   :  { %v1243_v50 = vld [vmem:[%s5424_s4 + $0x18] sm:$0xff]  ;;  %v1264_v53 = vld [vmem:[%s5424_s4 + $0xc0] sm:$0xff]  ;;  %v1262_v58 = vld [vmem:[%s5424_s4 + $0xb0] sm:$0xff] }
  0x13   :  { %v1248_v54 = vld [vmem:[%s5424_s4 + $0x40] sm:$0xff]  ;;  %v1247_v59 = vld [vmem:[%s5424_s4 + $0x38] sm:$0xff]  ;;  %v1242_v61 = vld [vmem:[%s5424_s4 + $0x10] sm:$0xff] }
  0x14   :  { %v1240_v55 = vld [vmem:[%s5424_s4] sm:$0xff]  ;;  %v1259_v60 = vld [vmem:[%s5424_s4 + $0x98] sm:$0xff]  ;;  %v1261_v62 = vld [vmem:[%s5424_s4 + $0xa8] sm:$0xff] }
  0x15   :  { %319 = vmatpush.bf16.xpose.msra.mxu0 %v309_v6  ;;  %v3444_v56 = vld [vmem:[%s5421_s1 + $0x20] sm:$0xff]  ;;  %v3445_v63 = vld [vmem:[%s5421_s1 + $0x28] sm:$0xff]  ;;  %v1494_v3 = vld [vmem:[%s5426_s6 + $0x18] sm:$0xff] }
  0x16   :  { %508 = vperm.xlu0 %3596, %v454_v17   ;;  %v1260_v57 = vld [vmem:[%s5424_s4 + $0xa0] sm:$0xff]  ;;  %v1241_v2 = vld [vmem:[%s5424_s4 + $0x8] sm:$0xff]  ;;  %v1263_v4 = vld [vmem:[%s5424_s4 + $0xb8] sm:$0xff] }
  0x17   :  { %513 = vperm.xlu1 %3597, %v455_v22   ;;  %v1491_v0 = vld [vmem:[%s5426_s6] sm:$0xff]  ;;  %v1492_v5 = vld [vmem:[%s5426_s6 + $0x8] sm:$0xff]  ;;  %v3446_v6 = vld [vmem:[%s5421_s1 + $0x30] sm:$0xff] }
  0x18   :  { %v1256_v1 = vld [vmem:[%s5424_s4 + $0x80] sm:$0xff]  ;;  %v1497_v7 = vld [vmem:[%s5426_s6 + $0x30] sm:$0xff]  ;;  %v1257_v11 = vld [vmem:[%s5424_s4 + $0x88] sm:$0xff] }
  0x19   :  { %498 = vperm.xlu2 %3598, %v452_v33   ;;  %v1495_v8 = vld [vmem:[%s5426_s6 + $0x20] sm:$0xff]  ;;  %v1258_v9 = vld [vmem:[%s5424_s4 + $0x90] sm:$0xff]  ;;  %v3447_v13 = vld [vmem:[%s5421_s1 + $0x38] sm:$0xff] }
  0x1a   :  { %v1503_v14 = vld [vmem:[%s5426_s6 + $0x60] sm:$0xff]  ;;  %v1501_v15 = vld [vmem:[%s5426_s6 + $0x50] sm:$0xff]  ;;  %v1506_v17 = vld [vmem:[%s5426_s6 + $0x78] sm:$0xff] }
  0x1b   :  { %v1496_v18 = vld [vmem:[%s5426_s6 + $0x28] sm:$0xff]  ;;  %v1509_v22 = vld [vmem:[%s5426_s6 + $0x90] sm:$0xff]  ;;  %v1507_v23 = vld [vmem:[%s5426_s6 + $0x80] sm:$0xff] }
  0x1c   :  { %v1504_v19 = vld [vmem:[%s5426_s6 + $0x68] sm:$0xff]  ;;  %v1499_v24 = vld [vmem:[%s5426_s6 + $0x40] sm:$0xff]  ;;  %v1505_v33 = vld [vmem:[%s5426_s6 + $0x70] sm:$0xff] }
  0x1d   :  { %320 = vmatpush.bf16.xpose.msra.mxu0 %v306_v10  ;;  %v1500_v10 = vld [vmem:[%s5426_s6 + $0x48] sm:$0xff] }
  0x1e   :  { %503 = vperm.xlu0 %3596, %v453_v21  }
  0x1f   :  { %488 = vperm.xlu1 %3597, %v450_v27   ;;  %v1502_v27 = vld [vmem:[%s5426_s6 + $0x58] sm:$0xff] }
  0x21   :  { %493 = vperm.xlu2 %3598, %v451_v37   ;;  %v1517_v37 = vld [vmem:[%s5426_s6 + $0xd0] sm:$0xff] }
  0x25   :  { %321 = vmatpush.bf16.xpose.msra.mxu0 %v303_v12  ;;  %v1498_v12 = vld [vmem:[%s5426_s6 + $0x38] sm:$0xff] }
  0x26   :  { %478 = vperm.xlu0 %3596, %v448_v26   ;;  %v1521_v26 = vld [vmem:[%s5426_s6 + $0xf0] sm:$0xff] }
  0x27   :  { %483 = vperm.xlu1 %3597, %v449_v31   ;;  %v1520_v31 = vld [vmem:[%s5426_s6 + $0xe8] sm:$0xff] }
  0x29   :  { %468 = vperm.xlu2 %3598, %v446_v40   ;;  %v1516_v40 = vld [vmem:[%s5426_s6 + $0xc8] sm:$0xff] }
  0x2d   :  { %322 = vmatpush.bf16.xpose.msra.mxu0 %v300_v16  ;;  %v1493_v16 = vld [vmem:[%s5426_s6 + $0x10] sm:$0xff] }
  0x2e   :  { %473 = vperm.xlu0 %3596, %v447_v29   ;;  %v3449_v29 = vld [vmem:[%s5421_s1 + $0x48] sm:$0xff] }
  0x2f   :  { %558 = vperm.xlu1 %3597, %v464_v34  }
  0x31   :  { %563 = vperm.xlu2 %3598, %v465_v45   ;;  %v1519_v45 = vld [vmem:[%s5426_s6 + $0xe0] sm:$0xff] }
  0x35   :  { %323 = vmatpush.bf16.xpose.msra.mxu0 %v297_v20  ;;  %v3448_v20 = vld [vmem:[%s5421_s1 + $0x40] sm:$0xff] }
  0x36   :  { %548 = vperm.xlu0 %3596, %v462_v32   ;;  %v1522_v32 = vld [vmem:[%s5426_s6 + $0xf8] sm:$0xff] }
  0x37   :  { %553 = vperm.xlu1 %3597, %v463_v38   ;;  %v3450_v38 = vld [vmem:[%s5421_s1 + $0x50] sm:$0xff] }
  0x39   :  { %1337 = vperm.xlu2 %3598, %v1254_v47   ;;  %v3451_v47 = vld [vmem:[%s5421_s1 + $0x58] sm:$0xff] }
  0x3d   :  { %324 = vmatpush.bf16.xpose.msra.mxu0 %v294_v25 }
  0x3e   :  { %1342 = vperm.xlu0 %3596, %v1255_v36   ;;  %v1508_v36 = vld [vmem:[%s5426_s6 + $0x88] sm:$0xff] }
  0x3f   :  { %1327 = vperm.xlu1 %3597, %v1252_v41   ;;  %v1538_v41 = vld [vmem:[%s5426_s6 + $0x178] sm:$0xff] }
  0x41   :  { %1332 = vperm.xlu2 %3598, %v1253_v52  }
  0x44   :  { %2914 = vmatmul.msk.bf16.vlgmr.msra.gmra.mxu0 %vm232_vm0, %v3440_v28  ;;  %v1510_v28 = vld [vmem:[%s5426_s6 + $0x98] sm:$0xff] }
  0x46   :  { %1317 = vperm.xlu0 %3596, %v1250_v39  }
  0x47   :  { %1322 = vperm.xlu1 %3597, %v1251_v44   ;;  %v1553_v44 = vld [vmem:[%s5426_s6 + $0x1f0] sm:$0xf] }
  0x49   :  { %1307 = vperm.xlu2 %3598, %v1248_v54   ;;  %v1515_v54 = vld [vmem:[%s5426_s6 + $0xc0] sm:$0xff] }
  0x4e   :  { %1312 = vperm.xlu0 %3596, %v1249_v43  }
  0x4f   :  { %1297 = vperm.xlu1 %3597, %v1246_v48  }
  0x51   :  { %1302 = vperm.xlu2 %3598, %v1247_v59   ;;  %v1532_v59 = vld [vmem:[%s5426_s6 + $0x148] sm:$0xff] }
  0x54   :  { %2915 = vmatmul.msk.bf16.gmra.mxu0 %vm232_vm0, %v3441_v35  ;;  %v1537_v35 = vld [vmem:[%s5426_s6 + $0x170] sm:$0xff] }
  0x56   :  { %1287 = vperm.xlu0 %3596, %v1244_v46   ;;  %v1535_v46 = vld [vmem:[%s5426_s6 + $0x160] sm:$0xff] }
  0x57   :  { %1292 = vperm.xlu1 %3597, %v1245_v51   ;;  %v1518_v51 = vld [vmem:[%s5426_s6 + $0xd8] sm:$0xff] }
  0x59   :  { %1277 = vperm.xlu2 %3598, %v1242_v61  }
  0x5e   :  { %1282 = vperm.xlu0 %3596, %v1243_v50   ;;  %v1513_v50 = vld [vmem:[%s5426_s6 + $0xb0] sm:$0xff] }
  0x5f   :  { %1267 = vperm.xlu1 %3597, %v1240_v55   ;;  %v1534_v55 = vld [vmem:[%s5426_s6 + $0x158] sm:$0xff] }
  0x61   :  { %1272 = vperm.xlu2 %3598, %v1241_v2  }
  0x64   :  { %2916 = vmatmul.msk.bf16.gmra.mxu0 %vm232_vm0, %v3442_v42  ;;  %v1511_v42 = vld [vmem:[%s5426_s6 + $0xa0] sm:$0xff] }
  0x66   :  { %1387 = vperm.xlu0 %3596, %v1264_v53   ;;  %v1531_v53 = vld [vmem:[%s5426_s6 + $0x140] sm:$0xff] }
  0x67   :  { %1377 = vperm.xlu1 %3597, %v1262_v58   ;;  %v1552_v58 = vld [vmem:[%s5426_s6 + $0x1e8] sm:$0xff] }
  0x69   :  { %1382 = vperm.xlu2 %3598, %v1263_v4   ;;  %v1550_v4 = vld [vmem:[%s5426_s6 + $0x1d8] sm:$0xff] }
  0x6e   :  { %1367 = vperm.xlu0 %3596, %v1260_v57  }
  0x6f   :  { %1372 = vperm.xlu1 %3597, %v1261_v62   ;;  %v1549_v62 = vld [vmem:[%s5426_s6 + $0x1d0] sm:$0xff] }
  0x71   :  { %1357 = vperm.xlu2 %3598, %v1258_v9   ;;  %v1547_v9 = vld [vmem:[%s5426_s6 + $0x1c0] sm:$0xff] }
  0x74   :  { %2917 = vmatmul.msk.bf16.gmra.mxu0 %vm232_vm0, %v3443_v49  ;;  %v1533_v49 = vld [vmem:[%s5426_s6 + $0x150] sm:$0xff] }
  0x76   :  { %1362 = vperm.xlu0 %3596, %v1259_v60   ;;  %v1536_v60 = vld [vmem:[%s5426_s6 + $0x168] sm:$0xff] }
  0x77   :  { %1347 = vperm.xlu1 %3597, %v1256_v1   ;;  %v3453_v1 = vld [vmem:[%s5421_s1 + $0x68] sm:$0xff] }
  0x79   :  { %1352 = vperm.xlu2 %3598, %v1257_v11  }
  0x7e   :  { %1556 = vperm.xlu0 %3596, %v1491_v0   ;;  %v1529_v0 = vld [vmem:[%s5426_s6 + $0x130] sm:$0xff] }
  0x7f   :  { %1561 = vperm.xlu1 %3597, %v1492_v5   ;;  %v1512_v5 = vld [vmem:[%s5426_s6 + $0xa8] sm:$0xff] }
  0x81   :  { %1566 = vperm.xlu2 %3598, %v1493_v16   ;;  %v1543_v16 = vld [vmem:[%s5426_s6 + $0x1a0] sm:$0xff] }
  0x84   :  { %2918 = vmatmul.msk.bf16.gmra.mxu0 %vm232_vm0, %v3444_v56  ;;  %v3452_v56 = vld [vmem:[%s5421_s1 + $0x60] sm:$0xff] }
  0x86   :  { %1571 = vperm.xlu0 %3596, %v1494_v3   ;;  %v1528_v3 = vld [vmem:[%s5426_s6 + $0x128] sm:$0xff] }
  0x87   :  { %1576 = vperm.xlu1 %3597, %v1495_v8   ;;  %v1551_v8 = vld [vmem:[%s5426_s6 + $0x1e0] sm:$0xff] }
  0x89   :  { %1581 = vperm.xlu2 %3598, %v1496_v18   ;;  %v1523_v18 = vld [vmem:[%s5426_s6 + $0x100] sm:$0xff] }
  0x8e   :  { %1586 = vperm.xlu0 %3596, %v1497_v7   ;;  %v1525_v7 = vld [vmem:[%s5426_s6 + $0x110] sm:$0xff] }
  0x8f   :  { %1591 = vperm.xlu1 %3597, %v1498_v12   ;;  %v1546_v12 = vld [vmem:[%s5426_s6 + $0x1b8] sm:$0xff] }
  0x91   :  { %1596 = vperm.xlu2 %3598, %v1499_v24   ;;  %v1548_v24 = vld [vmem:[%s5426_s6 + $0x1c8] sm:$0xff] }
  0x94   :  { %2919 = vmatmul.msk.bf16.gmra.mxu0 %vm232_vm0, %v3445_v63  ;;  %v1514_v63 = vld [vmem:[%s5426_s6 + $0xb8] sm:$0xff] }
  0x96   :  { %1601 = vperm.xlu0 %3596, %v1500_v10   ;;  %v3454_v10 = vld [vmem:[%s5421_s1 + $0x70] sm:$0xff] }
  0x97   :  { %1606 = vperm.xlu1 %3597, %v1501_v15  }
  0x99   :  { %1611 = vperm.xlu2 %3598, %v1502_v27   ;;  %v2687_v27 = vld [vmem:[#allocation2] sm:$0x1] }
  0x9e   :  { %1616 = vperm.xlu0 %3596, %v1503_v14   ;;  %v1530_v14 = vld [vmem:[%s5426_s6 + $0x138] sm:$0xff] }
  0x9f   :  { %1621 = vperm.xlu1 %3597, %v1504_v19   ;;  %v3455_v19 = vld [vmem:[%s5421_s1 + $0x78] sm:$0xff] }
  0xa1   :  { %1626 = vperm.xlu2 %3598, %v1505_v33   ;;  %v1524_v33 = vld [vmem:[%s5426_s6 + $0x108] sm:$0xff] }
  0xa4   :  { %2920 = vmatmul.msk.bf16.gmra.mxu0 %vm232_vm0, %v3446_v6 }
  0xa6   :  { %1631 = vperm.xlu0 %3596, %v1506_v17   ;;  %v1527_v17 = vld [vmem:[%s5426_s6 + $0x120] sm:$0xff] }
  0xa7   :  { %1636 = vperm.xlu1 %3597, %v1507_v23   ;;  %v1544_v23 = vld [vmem:[%s5426_s6 + $0x1a8] sm:$0xff] }
  0xa9   :  { %1641 = vperm.xlu2 %3598, %v1508_v36   ;;  %v1541_v36 = vld [vmem:[%s5426_s6 + $0x190] sm:$0xff] }
  0xae   :  { %1646 = vperm.xlu0 %3596, %v1509_v22   ;;  %v1542_v22 = vld [vmem:[%s5426_s6 + $0x198] sm:$0xff] }
  0xaf   :  { %1651 = vperm.xlu1 %3597, %v1510_v28   ;;  %v1545_v28 = vld [vmem:[%s5426_s6 + $0x1b0] sm:$0xff] }
  0xb1   :  { %1656 = vperm.xlu2 %3598, %v1511_v42   ;;  %v3458_v42 = vld [vmem:[%s5421_s1 + $0x90] sm:$0xff] }
  0xb4   :  { %2921 = vmatmul.msk.bf16.gmra.mxu0 %vm232_vm0, %v3447_v13  ;;  %v1526_v13 = vld [vmem:[%s5426_s6 + $0x118] sm:$0xff] }
  0xb6   :  { %1706 = vperm.xlu0 %3596, %v1521_v26  }
  0xb7   :  { %1711 = vperm.xlu1 %3597, %v1522_v32  }
  0xb9   :  { %1696 = vperm.xlu2 %3598, %v1519_v45  }
  0xbe   :  { %1701 = vperm.xlu0 %3596, %v1520_v31   ;;  %v3456_v31 = vld [vmem:[%s5421_s1 + $0x80] sm:$0xff] }
  0xbf   :  { %1686 = vperm.xlu1 %3597, %v1517_v37   ;;  %v3457_v37 = vld [vmem:[%s5421_s1 + $0x88] sm:$0xff] }
  0xc1   :  { %v3925_v21 = vpop.f32.mrf.mxu0  ;;  %1691 = vperm.xlu2 %3598, %v1518_v51  }
  0xc4   :  { %2922 = vmatmul.msk.bf16.gmra.mxu0 %vm232_vm0, %v3448_v20 }
  0xc6   :  { %1786 = vperm.xlu0 %3596, %v1537_v35  }
  0xc7   :  { %1791 = vperm.xlu1 %3597, %v1538_v41  }
  0xc9   :  { %v3937_v25 = vpop.f32.mrf.mxu0  ;;  %1676 = vperm.xlu2 %3598, %v1515_v54  }
  0xce   :  { %1681 = vperm.xlu0 %3596, %v1516_v40   ;;  %v1540_v40 = vld [vmem:[%s5426_s6 + $0x188] sm:$0xff] }
  0xcf   :  { %1776 = vperm.xlu1 %3597, %v1535_v46   ;;  %v3459_v46 = vld [vmem:[%s5421_s1 + $0x98] sm:$0xff] }
  0xd1   :  { %v3951_v30 = vpop.f32.mrf.mxu0  ;;  %1781 = vperm.xlu2 %3598, %v1536_v60   ;;  %v529_v60 = vpop.permute.xlu1 %528 }
  0xd4   :  { %2923 = vmatmul.msk.bf16.gmra.mxu0 %vm232_vm0, %v3449_v29  ;;  %v1539_v29 = vld [vmem:[%s5426_s6 + $0x180] sm:$0xff] }
  0xd6   :  { %1866 = vperm.xlu0 %3596, %v1553_v44  }
  0xd7   :  { %1666 = vperm.xlu1 %3597, %v1513_v50  }
  0xd9   :  { %v3963_v34 = vpop.f32.mrf.mxu0  ;;  %1671 = vperm.xlu2 %3598, %v1514_v63   ;;  %v539_v63 = vpop.permute.xlu0 %538 }
  0xde   :  { %1766 = vperm.xlu0 %3596, %v1533_v49  }
  0xdf   :  { %1771 = vperm.xlu1 %3597, %v1534_v55  }
  0xe1   :  { %v3977_v39 = vpop.f32.mrf.mxu0  ;;  %1661 = vperm.xlu2 %3598, %v1512_v5  }
  0xe4   :  { %2924 = vmatmul.msk.bf16.gmra.mxu0 %vm232_vm0, %v3450_v38 }
  0xe6   :  { %1756 = vperm.xlu0 %3596, %v1531_v53  }
  0xe7   :  { %1761 = vperm.xlu1 %3597, %v1532_v59  }
  0xe9   :  { %v3989_v43 = vpop.f32.mrf.mxu0  ;;  %1856 = vperm.xlu2 %3598, %v1551_v8  }
  0xee   :  { %1861 = vperm.xlu0 %3596, %v1552_v58  }
  0xef   :  { %1746 = vperm.xlu1 %3597, %v1529_v0   ;;  %v519_v0 = vpop.permute.xlu2 %518 }
  0xf1   :  { %v4003_v48 = vpop.f32.mrf.mxu0  ;;  %1751 = vperm.xlu2 %3598, %v1530_v14  }
  0xf4   :  { %2925 = vmatmul.msk.bf16.gmra.mxu0 %vm232_vm0, %v3451_v47 }
  0xf6   :  { %1846 = vperm.xlu0 %3596, %v1549_v62  }
  0xf7   :  { %1851 = vperm.xlu1 %3597, %v1550_v4   ;;  %v544_v4 = vpop.permute.xlu0 %543 }
  0xf9   :  { %v4015_v52 = vpop.f32.mrf.mxu0  ;;  %1736 = vperm.xlu2 %3598, %v1527_v17  }
  0xfe   :  { %1741 = vperm.xlu0 %3596, %v1528_v3   ;;  %v534_v3 = vpop.permute.xlu1 %533 }
  0xff   :  { %1836 = vperm.xlu1 %3597, %v1547_v9   ;;  %v509_v9 = vpop.permute.xlu0 %508 }
 0x101   :  { %v4029_v57 = vpop.f32.mrf.mxu0  ;;  %1841 = vperm.xlu2 %3598, %v1548_v24  }
 0x104   :  { %2926 = vmatmul.msk.bf16.gmra.mxu0 %vm232_vm0, %v3452_v56 }
 0x106   :  { %1726 = vperm.xlu0 %3596, %v1525_v7   ;;  %v524_v7 = vpop.permute.xlu2 %523  ;;  %v514_v8 = vpop.permute.xlu1 %513 }
 0x107   :  { %1731 = vperm.xlu1 %3597, %v1526_v13  }
 0x109   :  { %v4041_v61 = vpop.f32.mrf.mxu0  ;;  %1826 = vperm.xlu2 %3598, %v1545_v28  }
 0x10e   :  { %1831 = vperm.xlu0 %3596, %v1546_v12  }
 0x10f   :  { %1716 = vperm.xlu1 %3597, %v1523_v18  }
 0x111   :  { %v4055_v2 = vpop.f32.mrf.mxu0  ;;  %1721 = vperm.xlu2 %3598, %v1524_v33  }
 0x114   :  { %2927 = vmatmul.msk.bf16.gmra.mxu0 %vm232_vm0, %v3453_v1 }
 0x116   :  { %1816 = vperm.xlu0 %3596, %v1543_v16  }
 0x117   :  { %1821 = vperm.xlu1 %3597, %v1544_v23  }
 0x119   :  { %v4067_v6 = vpop.f32.mrf.mxu0  ;;  %1806 = vperm.xlu2 %3598, %v1541_v36  }
 0x11e   :  { %1811 = vperm.xlu0 %3596, %v1542_v22  }
 0x11f   :  { %1796 = vperm.xlu1 %3597, %v1539_v29  }
 0x121   :  { %v4081_v11 = vpop.f32.mrf.mxu0  ;;  %1801 = vperm.xlu2 %3598, %v1540_v40  }
 0x124   :  { %2928 = vmatmul.msk.bf16.gmra.mxu0 %vm232_vm0, %v3454_v10 }
 0x126   :  { %2690 = vperm.xlu0 %3596, %v2687_v27   ;;  %v489_v27 = vpop.permute.xlu1 %488 }
 0x129   :  { %v4093_v15 = vpop.f32.mrf.mxu0 }
 0x131   :  { %v361_v20 = vpop.f32.mrf.mxu0 }
 0x134   :  { %2929 = vmatmul.msk.bf16.gmra.mxu0 %vm232_vm0, %v3455_v19  ;;  %v499_v19 = vpop.permute.xlu2 %498 }
 0x139   :  { %v363_v26 = vpop.f32.mrf.mxu0 }
 0x141   :  { %v4126_v32 = vpop.f32.mrf.mxu0 }
 0x144   :  { %2930 = vmatmul.msk.bf16.gmra.mxu0 %vm232_vm0, %v3456_v31  ;;  %v504_v31 = vpop.permute.xlu0 %503 }
 0x149   :  { %v4132_v35 = vpop.f32.mrf.mxu0 }
 0x151   :  { %v4140_v38 = vpop.f32.mrf.mxu0 }
 0x154   :  { %2931 = vmatmul.msk.bf16.gmra.mxu0 %vm232_vm0, %v3457_v37 }
 0x159   :  { %v4146_v41 = vpop.f32.mrf.mxu0 }
 0x161   :  { %v4151_v44 = vpop.f32.mrf.mxu0 }
 0x164   :  { %2932 = vmatmul.msk.bf16.gmra.mxu0 %vm232_vm0, %v3458_v42  ;;  %v494_v42 = vpop.permute.xlu2 %493 }
 0x169   :  { %v4154_v45 = vpop.f32.mrf.mxu0 }
 0x171   :  { %v4159_v47 = vpop.f32.mrf.mxu0 }
 0x174   :  { %2933 = vmatmul.msk.bf16.gmra.mxu0 %vm232_vm0, %v3459_v46 }
 0x179   :  { %v4162_v49 = vpop.f32.mrf.mxu0 }
 0x181   :  { %v4164_v50 = vpop.f32.mrf.mxu0 }
 0x189   :  { %v388_v51 = vpop.f32.mrf.mxu0 }
 0x191   :  { %v391_v53 = vpop.f32.mrf.mxu0 }
 0x192   :  { %v432_v46 = vmax.f32 %v4003_v48, %v391_v53  ;;  %v428_v48 = vmax.f32 %v3951_v30, %v4159_v47  ;;  %v2936_v47 = vld [vmem:[%s5423_s3] sm:$0xf] }
 0x199   :  { %v393_v54 = vpop.f32.mrf.mxu0 }
 0x19a   :  { %v433_v37 = vmax.f32 %v4015_v52, %v393_v54  ;;  %v429_v52 = vmax.f32 %v3963_v34, %v4162_v49 }
 0x1a1   :  { %v396_v55 = vpop.f32.mrf.mxu0 }
 0x1a9   :  { %v398_v56 = vpop.f32.mrf.mxu0 }
 0x1aa   :  { %v435_v33 = vmax.f32 %v4041_v61, %v398_v56  ;;  %v573_v56 = vadd.f32 %v504_v31, %v433_v37  ;;  %v2976_v37 = vld [vmem:[%s5423_s3 + $0x50] sm:$0xf] }
 0x1ac   :  { %v575_v40 = vadd.f32 %v514_v8, %v435_v33  ;;  %v3477_v33 = vld [vmem:[%s5423_s3 + $0x44] sm:$0xf0] }
 0x1b1   :  { %v401_v58 = vpop.f32.mrf.mxu0 }
 0x1b2   :  { %v436_v28 = vmax.f32 %v4055_v2, %v401_v58  ;;  %v484_v58 = vpop.permute.xlu1 %483 }
 0x1b4   :  { %v576_v36 = vadd.f32 %v519_v0, %v436_v28  ;;  %v469_v0 = vpop.permute.xlu2 %468  ;;  %v2960_v28 = vld [vmem:[%s5423_s3 + $0x30] sm:$0xf] }
 0x1b9   :  { %v403_v59 = vpop.f32.mrf.mxu0 }
 0x1ba   :  { %v437_v22 = vmax.f32 %v4067_v6, %v403_v59 }
 0x1c1   :  { %v406_v62 = vpop.f32.mrf.mxu0 }
 0x1c2   :  { %v438_v16 = vmax.f32 %v4081_v11, %v406_v62  ;;  %v434_v11 = vmax.f32 %v4029_v57, %v396_v55  ;;  %v479_v62 = vpop.permute.xlu0 %478  ;;  %v430_v57 = vmax.f32 %v3977_v39, %v4164_v50  ;;  %v572_v55 = vadd.f32 %v499_v19, %v432_v46  ;;  %v559_v39 = vpop.permute.xlu1 %558  ;;  %v3002_v46 = vld [vmem:[%s5423_s3 + $0x88] sm:$0xf0] }
 0x1c3   :  { %v426_v50 = vmax.f32 %v3925_v21, %v4151_v44 }
 0x1c4   :  { %v578_v29 = vadd.f32 %v529_v60, %v438_v16  ;;  %v574_v2 = vadd.f32 %v509_v9, %v434_v11  ;;  %v431_v60 = vmax.f32 %v3989_v43, %v388_v51  ;;  %v639_v54 = vpack.c.bf16 %v573_v56, %v572_v55  ;;  %v564_v9 = vpop.permute.xlu2 %563  ;;  %v2994_v11 = vld [vmem:[%s5423_s3 + $0x78] sm:$0xf0]  ;;  %v3483_v55 = vld [vmem:[%s5423_s3 + $0x74] sm:$0xf0] }
 0x1c5   :  { %v570_v53 = vadd.f32 %v489_v27, %v430_v57  ;;  %v427_v51 = vmax.f32 %v3937_v25, %v4154_v45  ;;  %v3469_v25 = vld [vmem:[%s5423_s3 + $0x4] sm:$0xf0]  ;;  %v3010_v56 = vld [vmem:[%s5423_s3 + $0x98] sm:$0xf0]  ;;  %v2992_v57 = vld [vmem:[%s5423_s3 + $0x70] sm:$0xf] }
 0x1c6   :  { %v640_v61 = vpack.c.bf16 %v575_v40, %v574_v2 }
 0x1c9   :  { %v408_v1 = vpop.f32.mrf.mxu0 }
 0x1ca   :  { %v439_v13 = vmax.f32 %v4093_v15, %v408_v1  ;;  %v474_v34 = vpop.permute.xlu0 %473 }
 0x1cc   :  { %v579_v24 = vadd.f32 %v534_v3, %v439_v13  ;;  %v569_v3 = vadd.f32 %v484_v58, %v429_v52  ;;  %v2984_v58 = vld [vmem:[%s5423_s3 + $0x60] sm:$0xf]  ;;  %v2993_v52 = vor.u32 %v3483_v55, %v2992_v57  ;;  %v3074_v57 = vld [vmem:[%s5423_s3 + $0x118] sm:$0xf0] }
 0x1ce   :  { %v642_v15 = vpack.c.bf16 %v579_v24, %v578_v29  ;;  %v3473_v24 = vld [vmem:[%s5423_s3 + $0x24] sm:$0xf0]  ;;  %v3475_v29 = vld [vmem:[%s5423_s3 + $0x34] sm:$0xf0] }
 0x1cf   :  { %v2961_v31 = vor.u32 %v3475_v29, %v2960_v28  ;;  %v3498_v28 = vld [vmem:[%s5423_s3 + $0xf4] sm:$0xf]  ;;  %v3058_v29 = vld [vmem:[%s5423_s3 + $0xf8] sm:$0xf0] }
 0x1d1   :  { %v411_v5 = vpop.f32.mrf.mxu0 }
 0x1d2   :  { %v440_v10 = vmax.f32 %v361_v20, %v411_v5  ;;  %v567_v5 = vadd.f32 %v474_v34, %v427_v51  ;;  %v3487_v34 = vld [vmem:[%s5423_s3 + $0x94] sm:$0xf0] }
 0x1d4   :  { %v580_v17 = vadd.f32 %v539_v63, %v440_v10  ;;  %v571_v63 = vadd.f32 %v494_v42, %v431_v60  ;;  %v2937_v10 = vor.u32 %v3469_v25, %v2936_v47  ;;  %v3484_v42 = vld [vmem:[%s5423_s3 + $0x84] sm:$0xf]  ;;  %v3034_v47 = vld [vmem:[%s5423_s3 + $0xc8] sm:$0xf0] }
 0x1d5   :  { %v3005_v2 = vor.u32 %v3484_v42, %v3002_v46  ;;  %v3048_v46 = vld [vmem:[%s5423_s3 + $0xe0] sm:$0xf] }
 0x1d6   :  { %v638_v1 = vpack.c.bf16 %v571_v63, %v570_v53  ;;  %v3018_v63 = vld [vmem:[%s5423_s3 + $0xa8] sm:$0xf0]  ;;  %v3000_v53 = vld [vmem:[%s5423_s3 + $0x80] sm:$0xf] }
 0x1d9   :  { %v413_v12 = vpop.f32.mrf.mxu0 }
 0x1da   :  { %v441_v14 = vmax.f32 %v363_v26, %v413_v12  ;;  %v577_v26 = vadd.f32 %v524_v7, %v437_v22  ;;  %v566_v7 = vadd.f32 %v469_v0, %v426_v50  ;;  %v3485_v0 = vld [vmem:[%s5423_s3 + $0x84] sm:$0xf0] }
 0x1dc   :  { %v581_v18 = vadd.f32 %v544_v4, %v441_v14  ;;  %v641_v6 = vpack.c.bf16 %v577_v26, %v576_v36  ;;  %v568_v4 = vadd.f32 %v479_v62, %v428_v48  ;;  %v636_v8 = vpack.c.bf16 %v567_v5, %v566_v7  ;;  %v554_v14 = vpop.permute.xlu1 %553  ;;  %v3482_v26 = vld [vmem:[%s5423_s3 + $0x74] sm:$0xf] }
 0x1dd   :  { %v2997_v36 = vor.u32 %v3482_v26, %v2994_v11 }
 0x1de   :  { %v643_v23 = vpack.c.bf16 %v581_v18, %v580_v17  ;;  %v637_v49 = vpack.c.bf16 %v569_v3, %v568_v4  ;;  %v549_v18 = vpop.permute.xlu0 %548  ;;  %v3490_v3 = vld [vmem:[%s5423_s3 + $0xb4] sm:$0xf]  ;;  %v3008_v4 = vld [vmem:[%s5423_s3 + $0x90] sm:$0xf] }
 0x1e0   :  { %947 = vmatpush.bf16.msra.mxu1 %v643_v23  ;;  %v2952_v23 = vld [vmem:[%s5423_s3 + $0x20] sm:$0xf] }
 0x1e1   :  { %v416_v20 = vpop.f32.mrf.mxu0  ;;  %v2953_v27 = vor.u32 %v3473_v24, %v2952_v23 }
 0x1e2   :  { %v442_v12 = vmax.f32 %v4126_v32, %v416_v20  ;;  %v2944_v32 = vld [vmem:[%s5423_s3 + $0x10] sm:$0xf]  ;;  %v2968_v20 = vld [vmem:[%s5423_s3 + $0x40] sm:$0xf] }
 0x1e4   :  { %948 = vmatpush.bf16.msra.mxu1 %v642_v15  ;;  %v582_v19 = vadd.f32 %v549_v18, %v442_v12  ;;  %v2969_v15 = vor.u32 %v3477_v33, %v2968_v20  ;;  %v3042_v12 = vld [vmem:[%s5423_s3 + $0xd8] sm:$0xf0]  ;;  %v3040_v20 = vld [vmem:[%s5423_s3 + $0xd0] sm:$0xf]  ;;  %v3495_v33 = vld [vmem:[%s5423_s3 + $0xd4] sm:$0xf0] }
 0x1e8   :  { %949 = vmatpush.bf16.msra.mxu1 %v641_v6  ;;  %v3479_v6 = vld [vmem:[%s5423_s3 + $0x54] sm:$0xf0] }
 0x1e9   :  { %v418_v59 = vpop.f32.mrf.mxu0  ;;  %v2977_v40 = vor.u32 %v3479_v6, %v2976_v37  ;;  %v3500_v6 = vld [vmem:[%s5423_s3 + $0x104] sm:$0xf] }
 0x1ea   :  { %v443_v21 = vmax.f32 %v4132_v35, %v418_v59  ;;  %v3481_v59 = vld [vmem:[%s5423_s3 + $0x64] sm:$0xf0] }
 0x1eb   :  { %v2985_v60 = vor.u32 %v3481_v59, %v2984_v58 }
 0x1ec   :  { %950 = vmatpush.bf16.msra.mxu1 %v640_v61  ;;  %v583_v16 = vadd.f32 %v554_v14, %v443_v21  ;;  %v3486_v61 = vld [vmem:[%s5423_s3 + $0x94] sm:$0xf]  ;;  %v3489_v21 = vld [vmem:[%s5423_s3 + $0xa4] sm:$0xf0]  ;;  %v3491_v14 = vld [vmem:[%s5423_s3 + $0xb4] sm:$0xf0] }
 0x1ed   :  { %v3013_v62 = vor.u32 %v3486_v61, %v3010_v56 }
 0x1ee   :  { %v644_v35 = vpack.c.bf16 %v583_v16, %v582_v19  ;;  %v3496_v19 = vld [vmem:[%s5423_s3 + $0xe4] sm:$0xf] }
 0x1f0   :  { %951 = vmatpush.bf16.msra.mxu1 %v639_v54  ;;  %v3488_v54 = vld [vmem:[%s5423_s3 + $0xa4] sm:$0xf] }
 0x1f1   :  { %v421_v43 = vpop.f32.mrf.mxu0  ;;  %v3021_v48 = vor.u32 %v3488_v54, %v3018_v63  ;;  %v3499_v54 = vld [vmem:[%s5423_s3 + $0xf4] sm:$0xf0] }
 0x1f2   :  { %v444_v30 = vmax.f32 %v4140_v38, %v421_v43  ;;  %v3001_v43 = vor.u32 %v3485_v0, %v3000_v53 }
 0x1f4   :  { %952 = vmatpush.bf16.msra.mxu1 %v638_v1  ;;  %v584_v38 = vadd.f32 %v559_v39, %v444_v30  ;;  %v3026_v39 = vld [vmem:[%s5423_s3 + $0xb8] sm:$0xf0]  ;;  %v3492_v30 = vld [vmem:[%s5423_s3 + $0xc4] sm:$0xf] }
 0x1f5   :  { %v3029_v50 = vor.u32 %v3490_v3, %v3026_v39  ;;  %v3037_v25 = vor.u32 %v3492_v30, %v3034_v47  ;;  %v3501_v30 = vld [vmem:[%s5423_s3 + $0x104] sm:$0xf0] }
 0x1f8   :  { %953 = vmatpush.bf16.msra.mxu1 %v637_v49  ;;  %v3009_v49 = vor.u32 %v3487_v34, %v3008_v4  ;;  %v3082_v4 = vld [vmem:[%s5423_s3 + $0x128] sm:$0xf0] }
 0x1f9   :  { %v423_v45 = vpop.f32.mrf.mxu0 }
 0x1fa   :  { %v445_v44 = vmax.f32 %v4146_v41, %v423_v45  ;;  %v3471_v41 = vld [vmem:[%s5423_s3 + $0x14] sm:$0xf0]  ;;  %v3016_v45 = vld [vmem:[%s5423_s3 + $0xa0] sm:$0xf] }
 0x1fb   :  { %v2945_v22 = vor.u32 %v3471_v41, %v2944_v32  ;;  %v3032_v41 = vld [vmem:[%s5423_s3 + $0xc0] sm:$0xf] }
 0x1fc   :  { %v585_v13 = vadd.f32 %v564_v9, %v445_v44  ;;  %954 = vmatpush.bf16.msra.mxu1 %v636_v8  ;;  %v3017_v44 = vor.u32 %v3489_v21, %v3016_v45 }
 0x1fe   :  { %v645_v17 = vpack.c.bf16 %v585_v13, %v584_v38  ;;  %v3024_v13 = vld [vmem:[%s5423_s3 + $0xb0] sm:$0xf] }
 0x1ff   :  { %955 = vmatmul.bf16.vlgmr.msra.gmra.mxu1 %v2937_v10  ;;  %v3494_v10 = vld [vmem:[%s5423_s3 + $0xd4] sm:$0xf]  ;;  %v3025_v16 = vor.u32 %v3491_v14, %v3024_v13  ;;  %v3090_v13 = vld [vmem:[%s5423_s3 + $0x138] sm:$0xf0] }
 0x200   :  { %1087 = vmatpush.bf16.msrb.mxu1 %v645_v17  ;;  %3580 = vmatpush.bf16.msra.mxu2 %v645_v17  ;;  %v3045_v38 = vor.u32 %v3494_v10, %v3042_v12 }
 0x201   :  { %3581 = vmatpush.bf16.msra.mxu3 %v645_v17 }
 0x204   :  { %1088 = vmatpush.bf16.msrb.mxu1 %v644_v35  ;;  %3582 = vmatpush.bf16.msra.mxu2 %v644_v35 }
 0x205   :  { %3583 = vmatpush.bf16.msra.mxu3 %v644_v35  ;;  %v3050_v35 = vld [vmem:[%s5423_s3 + $0xe8] sm:$0xf0] }
 0x206   :  { %v3053_v32 = vor.u32 %v3496_v19, %v3050_v35  ;;  %v3503_v19 = vld [vmem:[%s5423_s3 + $0x114] sm:$0xf0] }
 0x207   :  { %3141 = vmatmul.msk.bf16.vlgmr.msra.gmra.mxu2 %vm871_vm1, %v2997_v36 }
 0x20f   :  { %960 = vmatmul.bf16.gmra.mxu1 %v2945_v22  ;;  %v3493_v22 = vld [vmem:[%s5423_s3 + $0xc4] sm:$0xf0] }
 0x210   :  { %v3033_v23 = vor.u32 %v3493_v22, %v3032_v41 }
 0x217   :  { %3142 = vmatmul.msk.bf16.gmra.mxu2 %vm871_vm1, %v3005_v2  ;;  %v3497_v2 = vld [vmem:[%s5423_s3 + $0xe4] sm:$0xf0] }
 0x218   :  { %v3049_v58 = vor.u32 %v3497_v2, %v3048_v46 }
 0x21f   :  { %965 = vmatmul.bf16.gmra.mxu1 %v2953_v27 }
 0x227   :  { %3143 = vmatmul.msk.bf16.gmra.mxu2 %vm871_vm1, %v3013_v62  ;;  %v3502_v62 = vld [vmem:[%s5423_s3 + $0x114] sm:$0xf] }
 0x228   :  { %v3077_v55 = vor.u32 %v3502_v62, %v3074_v57  ;;  %v3088_v57 = vld [vmem:[%s5423_s3 + $0x130] sm:$0xf] }
 0x22f   :  { %970 = vmatmul.bf16.gmra.mxu1 %v2961_v31  ;;  %v3061_v31 = vor.u32 %v3498_v28, %v3058_v29 }
 0x237   :  { %3144 = vmatmul.msk.bf16.gmra.mxu2 %vm871_vm1, %v3021_v48 }
 0x23f   :  { %975 = vmatmul.bf16.gmra.mxu1 %v2969_v15  ;;  %v3041_v15 = vor.u32 %v3495_v33, %v3040_v20  ;;  %v3098_v20 = vld [vmem:[%s5423_s3 + $0x148] sm:$0xf0] }
 0x247   :  { %3145 = vmatmul.msk.bf16.gmra.mxu2 %vm871_vm1, %v3029_v50  ;;  %v3504_v50 = vld [vmem:[%s5423_s3 + $0x124] sm:$0xf] }
 0x248   :  { %v3085_v34 = vor.u32 %v3504_v50, %v3082_v4  ;;  %v3114_v50 = vld [vmem:[%s5423_s3 + $0x168] sm:$0xf0] }
 0x24f   :  { %980 = vmatmul.bf16.gmra.mxu1 %v2977_v40  ;;  %v3066_v40 = vld [vmem:[%s5423_s3 + $0x108] sm:$0xf0] }
 0x250   :  { %v3069_v42 = vor.u32 %v3500_v6, %v3066_v40 }
 0x257   :  { %3146 = vmatmul.msk.bf16.gmra.mxu2 %vm871_vm1, %v3037_v25 }
 0x25f   :  { %985 = vmatmul.bf16.gmra.mxu1 %v2985_v60 }
 0x267   :  { %3147 = vmatmul.msk.bf16.gmra.mxu2 %vm871_vm1, %v3045_v38  ;;  %v3506_v38 = vld [vmem:[%s5423_s3 + $0x134] sm:$0xf] }
 0x268   :  { %v3093_v14 = vor.u32 %v3506_v38, %v3090_v13  ;;  %v3514_v38 = vld [vmem:[%s5423_s3 + $0x174] sm:$0xf]  ;;  %v3122_v13 = vld [vmem:[%s5423_s3 + $0x178] sm:$0xf0] }
 0x26f   :  { %990 = vmatmul.bf16.gmra.mxu1 %v2993_v52  ;;  %v3056_v52 = vld [vmem:[%s5423_s3 + $0xf0] sm:$0xf] }
 0x270   :  { %v3057_v63 = vor.u32 %v3499_v54, %v3056_v52 }
 0x277   :  { %3148 = vmatmul.msk.bf16.gmra.mxu2 %vm871_vm1, %v3053_v32 }
 0x27c   :  { %v4271_v51 = vpop.f32.mrf.mxu1 }
 0x27f   :  { %995 = vmatmul.bf16.gmra.mxu1 %v3001_v43 }
 0x284   :  { %v4273_v1 = vpop.f32.mrf.mxu1 }
 0x287   :  { %3149 = vmatmul.msk.bf16.gmra.mxu2 %vm871_vm1, %v3061_v31  ;;  %v3508_v31 = vld [vmem:[%s5423_s3 + $0x144] sm:$0xf] }
 0x288   :  { %v3101_v33 = vor.u32 %v3508_v31, %v3098_v20  ;;  %v3516_v20 = vld [vmem:[%s5423_s3 + $0x184] sm:$0xf] }
 0x28a   :  { %v1125_v11 = vpop.f32.mrf.mxu2 }
 0x28c   :  { %v4288_v5 = vpop.f32.mrf.mxu1 }
 0x28f   :  { %1000 = vmatmul.bf16.gmra.mxu1 %v3009_v49  ;;  %v3064_v49 = vld [vmem:[%s5423_s3 + $0x100] sm:$0xf] }
 0x290   :  { %v3065_v47 = vor.u32 %v3501_v30, %v3064_v49  ;;  %v3509_v49 = vld [vmem:[%s5423_s3 + $0x144] sm:$0xf0] }
 0x292   :  { %v1127_v37 = vpop.f32.mrf.mxu2 }
 0x294   :  { %v4290_v7 = vpop.f32.mrf.mxu1 }
 0x297   :  { %3150 = vmatmul.msk.bf16.gmra.mxu2 %vm871_vm1, %v3069_v42 }
 0x29a   :  { %v1130_v60 = vpop.f32.mrf.mxu2 }
 0x29c   :  { %v4305_v8 = vpop.f32.mrf.mxu1 }
 0x29f   :  { %1005 = vmatmul.bf16.gmra.mxu1 %v3017_v44 }
 0x2a2   :  { %v1132_v56 = vpop.f32.mrf.mxu2 }
 0x2a4   :  { %v4307_v9 = vpop.f32.mrf.mxu1 }
 0x2a7   :  { %3151 = vmatmul.msk.bf16.gmra.mxu2 %vm871_vm1, %v3077_v55  ;;  %v3507_v55 = vld [vmem:[%s5423_s3 + $0x134] sm:$0xf0] }
 0x2a8   :  { %v3089_v52 = vor.u32 %v3507_v55, %v3088_v57  ;;  %v3120_v57 = vld [vmem:[%s5423_s3 + $0x170] sm:$0xf]  ;;  %v3515_v55 = vld [vmem:[%s5423_s3 + $0x174] sm:$0xf0] }
 0x2aa   :  { %v1135_v53 = vpop.f32.mrf.mxu2 }
 0x2ac   :  { %v4322_v17 = vpop.f32.mrf.mxu1 }
 0x2af   :  { %1010 = vmatmul.bf16.gmra.mxu1 %v3025_v16  ;;  %v3072_v16 = vld [vmem:[%s5423_s3 + $0x110] sm:$0xf] }
 0x2b0   :  { %v3073_v35 = vor.u32 %v3503_v19, %v3072_v16  ;;  %v3104_v16 = vld [vmem:[%s5423_s3 + $0x150] sm:$0xf]  ;;  %v3511_v19 = vld [vmem:[%s5423_s3 + $0x154] sm:$0xf0] }
 0x2b2   :  { %v1137_v3 = vpop.f32.mrf.mxu2 }
 0x2b4   :  { %v4324_v18 = vpop.f32.mrf.mxu1 }
 0x2b7   :  { %3152 = vmatmul.msk.bf16.gmra.mxu2 %vm871_vm1, %v3085_v34  ;;  %v3096_v34 = vld [vmem:[%s5423_s3 + $0x140] sm:$0xf] }
 0x2b8   :  { %v3097_v30 = vor.u32 %v3509_v49, %v3096_v34  ;;  %v3128_v34 = vld [vmem:[%s5423_s3 + $0x180] sm:$0xf]  ;;  %v3517_v49 = vld [vmem:[%s5423_s3 + $0x184] sm:$0xf0] }
 0x2ba   :  { %v1140_v45 = vpop.f32.mrf.mxu2 }
 0x2bc   :  { %v4339_v24 = vpop.f32.mrf.mxu1 }
 0x2bf   :  { %1015 = vmatmul.bf16.gmra.mxu1 %v3033_v23 }
 0x2c2   :  { %v1142_v10 = vpop.f32.mrf.mxu2 }
 0x2c4   :  { %v4341_v27 = vpop.f32.mrf.mxu1 }
 0x2c5   :  { %5430 = vst [vmem:[#allocation6_spill] sm:$0xff] %v4341_v27 }
 0x2c7   :  { %3153 = vmatmul.msk.bf16.gmra.mxu2 %vm871_vm1, %v3093_v14  ;;  %v3125_v14 = vor.u32 %v3514_v38, %v3122_v13  ;;  %v1338_v38 = vpop.permute.xlu2 %1337 }
 0x2c9   :  { %3157 = vmatmul.msk.bf16.vlgmr.msra.gmra.mxu3 %vm871_vm1, %v3125_v14 }
 0x2ca   :  { %v1145_v41 = vpop.f32.mrf.mxu2 }
 0x2cc   :  { %v4356_v26 = vpop.f32.mrf.mxu1 }
 0x2cd   :  { %5431 = vst [vmem:[#allocation7_spill] sm:$0xff] %v4356_v26 }
 0x2cf   :  { %1020 = vmatmul.bf16.gmra.mxu1 %v3041_v15  ;;  %v3080_v15 = vld [vmem:[%s5423_s3 + $0x120] sm:$0xf] }
 0x2d2   :  { %v4426_v28 = vpop.f32.mrf.mxu2 }
 0x2d4   :  { %v4358_v36 = vpop.f32.mrf.mxu1 }
 0x2d5   :  { %5432 = vst [vmem:[#allocation8_spill] sm:$0xff] %v4358_v36 }
 0x2d7   :  { %3154 = vmatmul.msk.bf16.gmra.mxu2 %vm871_vm1, %v3101_v33  ;;  %v3130_v33 = vld [vmem:[%s5423_s3 + $0x188] sm:$0xf0] }
 0x2da   :  { %v1150_v40 = vpop.f32.mrf.mxu2 }
 0x2dc   :  { %v4373_v59 = vpop.f32.mrf.mxu1 }
 0x2dd   :  { %5433 = vst [vmem:[#allocation9_spill] sm:$0xff] %v4373_v59 }
 0x2df   :  { %1025 = vmatmul.bf16.gmra.mxu1 %v3049_v58 }
 0x2e2   :  { %v4445_v2 = vpop.f32.mrf.mxu2 }
 0x2e4   :  { %v4375_v61 = vpop.f32.mrf.mxu1 }
 0x2e5   :  { %5434 = vst [vmem:[#allocation10_spill] sm:$0xff] %v4375_v61 }
 0x2ec   :  { %v991_v48 = vpop.f32.mrf.mxu1 }
 0x2ed   :  { %v4390_v0 = vadd.f32 %v1125_v11, %v991_v48  ;;  %v3505_v11 = vld [vmem:[%s5423_s3 + $0x124] sm:$0xf0] }
 0x2ef   :  { %1030 = vmatmul.bf16.gmra.mxu1 %v3057_v63  ;;  %v1155_v63 = vpop.f32.mrf.mxu2 }
 0x2f4   :  { %v993_v43 = vpop.f32.mrf.mxu1 }
 0x2f5   :  { %v4392_v39 = vadd.f32 %v1127_v37, %v993_v43  ;;  %v3081_v37 = vor.u32 %v3505_v11, %v3080_v15  ;;  %v3133_v15 = vor.u32 %v3516_v20, %v3130_v33  ;;  %v3112_v11 = vld [vmem:[%s5423_s3 + $0x160] sm:$0xf] }
 0x2f7   :  { %v4466_v43 = vpop.f32.mrf.mxu2  ;;  %3158 = vmatmul.msk.bf16.gmra.mxu3 %vm871_vm1, %v3133_v15 }
 0x2fc   :  { %v996_v25 = vpop.f32.mrf.mxu1 }
 0x2fd   :  { %v4407_v21 = vadd.f32 %v1130_v60, %v996_v25  ;;  %v3510_v60 = vld [vmem:[%s5423_s3 + $0x154] sm:$0xf] }
 0x2ff   :  { %1035 = vmatmul.bf16.gmra.mxu1 %v3065_v47  ;;  %v1160_v25 = vpop.f32.mrf.mxu2 }
 0x304   :  { %v998_v44 = vpop.f32.mrf.mxu1 }
 0x305   :  { %v4409_v12 = vadd.f32 %v1132_v56, %v998_v44  ;;  %v3106_v56 = vld [vmem:[%s5423_s3 + $0x158] sm:$0xf0] }
 0x306   :  { %v3109_v62 = vor.u32 %v3510_v60, %v3106_v56 }
 0x308   :  { %3155 = vmatmul.msk.bf16.gmra.mxu2 %vm871_vm1, %v3109_v62 }
 0x30c   :  { %v1001_v32 = vpop.f32.mrf.mxu1 }
 0x30d   :  { %v4424_v22 = vadd.f32 %v1135_v53, %v1001_v32 }
 0x30f   :  { %1040 = vmatmul.bf16.gmra.mxu1 %v3073_v35  ;;  %v3105_v35 = vor.u32 %v3511_v19, %v3104_v16  ;;  %v3468_v16 = vld [vmem:[%s5423_s3 + $0x4] sm:$0xf]  ;;  %v2938_v19 = vld [vmem:[%s5423_s3 + $0x8] sm:$0xf0] }
 0x310   :  { %v2941_v20 = vor.u32 %v3468_v16, %v2938_v19 }
 0x314   :  { %v1003_v23 = vpop.f32.mrf.mxu1 }
 0x315   :  { %v4428_v29 = vadd.f32 %v1137_v3, %v1003_v23  ;;  %v3512_v3 = vld [vmem:[%s5423_s3 + $0x164] sm:$0xf] }
 0x316   :  { %v3117_v4 = vor.u32 %v3512_v3, %v3114_v50 }
 0x318   :  { %3156 = vmatmul.msk.bf16.gmra.mxu2 %vm871_vm1, %v3117_v4 }
 0x31c   :  { %v1006_v6 = vpop.f32.mrf.mxu1 }
 0x31d   :  { %v4443_v42 = vadd.f32 %v1140_v45, %v1006_v6 }
 0x31f   :  { %1045 = vmatmul.bf16.gmra.mxu1 %v3081_v37  ;;  %v3513_v37 = vld [vmem:[%s5423_s3 + $0x164] sm:$0xf0] }
 0x324   :  { %v1008_v46 = vpop.f32.mrf.mxu1 }
 0x325   :  { %v4447_v58 = vadd.f32 %v1142_v10, %v1008_v46  ;;  %v4485_v10 = vpop.f32.mrf.mxu2 }
 0x32c   :  { %v1011_v54 = vpop.f32.mrf.mxu1 }
 0x32d   :  { %v4462_v48 = vadd.f32 %v1145_v41, %v1011_v54  ;;  %v1165_v23 = vpop.f32.mrf.mxu2 }
 0x32f   :  { %1050 = vmatmul.bf16.gmra.mxu1 %v3089_v52  ;;  %v3121_v52 = vor.u32 %v3515_v55, %v3120_v57  ;;  %v2946_v57 = vld [vmem:[%s5423_s3 + $0x18] sm:$0xf0]  ;;  %v1343_v55 = vpop.permute.xlu0 %1342 }
 0x334   :  { %v4464_v53 = vpop.f32.mrf.mxu1 }
 0x335   :  { %v4516_v6 = vpop.f32.mrf.mxu2 }
 0x33c   :  { %v1016_v47 = vpop.f32.mrf.mxu1 }
 0x33d   :  { %v4481_v45 = vadd.f32 %v1150_v40, %v1016_v47  ;;  %v3113_v40 = vor.u32 %v3513_v37, %v3112_v11  ;;  %v1170_v56 = vpop.f32.mrf.mxu2 }
 0x33f   :  { %1055 = vmatmul.bf16.gmra.mxu1 %v3097_v30  ;;  %v3129_v30 = vor.u32 %v3517_v49, %v3128_v34 }
 0x344   :  { %v4483_v44 = vpop.f32.mrf.mxu1 }
 0x34c   :  { %v1021_v32 = vpop.f32.mrf.mxu1 }
 0x34d   :  { %v4500_v41 = vadd.f32 %v1155_v63, %v1021_v32  ;;  %v4529_v63 = vpop.f32.mrf.mxu2  ;;  %v4555_v32 = vpop.permute.xlu2 %1332 }
 0x34e   :  { %5435 = vst [vmem:[#allocation11_spill] sm:$0xff] %v4529_v63 }
 0x34f   :  { %1060 = vmatmul.bf16.gmra.mxu1 %v3105_v35  ;;  %v4553_v35 = vpop.permute.xlu1 %1327  ;;  %5438 = vst [vmem:[#allocation14_spill] sm:$0xff] %v4555_v32 }
 0x350   :  { %5437 = vst [vmem:[#allocation13_spill] sm:$0xff] %v4553_v35 }
 0x354   :  { %v4502_v31 = vpop.f32.mrf.mxu1 }
 0x355   :  { %v1175_v4 = vpop.f32.mrf.mxu2  ;;  %v4562_v37 = vpop.permute.xlu2 %1307 }
 0x356   :  { %5441 = vst [vmem:[#allocation17_spill] sm:$0xff] %v4562_v37 }
 0x357   :  { %v4560_v11 = vpop.permute.xlu1 %1322 }
 0x358   :  { %5440 = vst [vmem:[#allocation16_spill] sm:$0xff] %v4560_v11  ;;  %v3474_v11 = vld [vmem:[%s5423_s3 + $0x34] sm:$0xf] }
 0x35c   :  { %v1026_v46 = vpop.f32.mrf.mxu1 }
 0x35d   :  { %v4519_v60 = vadd.f32 %v1160_v25, %v1026_v46  ;;  %v4543_v13 = vpop.f32.mrf.mxu2  ;;  %v4576_v34 = vpop.permute.xlu2 %1302 }
 0x35e   :  { %5436 = vst [vmem:[#allocation12_spill] sm:$0xff] %v4543_v13 }
 0x35f   :  { %1065 = vmatmul.bf16.gmra.mxu1 %v3113_v40 }
 0x364   :  { %v4521_v62 = vpop.f32.mrf.mxu1 }
 0x36c   :  { %v1031_v54 = vpop.f32.mrf.mxu1 }
 0x36d   :  { %v4531_v3 = vadd.f32 %v1165_v23, %v1031_v54  ;;  %v1180_v23 = vpop.f32.mrf.mxu2 }
 0x36f   :  { %1070 = vmatmul.bf16.gmra.mxu1 %v3121_v52 }
 0x374   :  { %v4533_v50 = vpop.f32.mrf.mxu1 }
 0x375   :  { %v4566_v46 = vpop.f32.mrf.mxu2 }
 0x376   :  { %5443 = vst [vmem:[#allocation19_spill] sm:$0xff] %v4566_v46 }
 0x37c   :  { %v1036_v47 = vpop.f32.mrf.mxu1 }
 0x37d   :  { %v4541_v25 = vadd.f32 %v1170_v56, %v1036_v47  ;;  %v3470_v56 = vld [vmem:[%s5423_s3 + $0x14] sm:$0xf]  ;;  %v4581_v47 = vpop.permute.xlu0 %1317 }
 0x37e   :  { %v2949_v52 = vor.u32 %v3470_v56, %v2946_v57  ;;  %5445 = vst [vmem:[#allocation21_spill] sm:$0xff] %v4581_v47 }
 0x37f   :  { %1075 = vmatmul.bf16.gmra.mxu1 %v3129_v30  ;;  %v1185_v30 = vpop.f32.mrf.mxu2 }
 0x384   :  { %v4545_v14 = vpop.f32.mrf.mxu1 }
 0x385   :  { %v4597_v32 = vpop.permute.xlu0 %1312 }
 0x386   :  { %5448 = vst [vmem:[#allocation24_spill] sm:$0xff] %v4597_v32 }
 0x387   :  { %v1187_v56 = vpop.f32.mrf.mxu2 }
 0x38c   :  { %v1041_v33 = vpop.f32.mrf.mxu1 }
 0x38d   :  { %v4557_v15 = vadd.f32 %v1175_v4, %v1041_v33  ;;  %v4574_v4 = vpop.permute.xlu1 %1297  ;;  %v3472_v33 = vld [vmem:[%s5423_s3 + $0x24] sm:$0xf]  ;;  %v4604_v59 = vpop.permute.xlu0 %1287 }
 0x38f   :  { %5439 = vst [vmem:[#allocation15_spill] sm:$0xff] %v4557_v15  ;;  %3134 = vmatmul.msk.bf16.vlgmr.msrb.gmra.mxu1 %vm871_vm1, %v2941_v20  ;;  %v4587_v20 = vpop.permute.xlu2 %1277  ;;  %v1190_v46 = vpop.f32.mrf.mxu2 }
 0x394   :  { %v4564_v40 = vpop.f32.mrf.mxu1 }
 0x395   :  { %5442 = vst [vmem:[#allocation18_spill] sm:$0xff] %v4564_v40  ;;  %v4585_v19 = vpop.permute.xlu1 %1292  ;;  %v4619_v32 = vpop.permute.xlu0 %1282 }
 0x397   :  { %v4602_v61 = vpop.permute.xlu2 %1272  ;;  %v1192_v47 = vpop.f32.mrf.mxu2 }
 0x39c   :  { %v1046_v54 = vpop.f32.mrf.mxu1 }
 0x39d   :  { %v4578_v49 = vadd.f32 %v1180_v23, %v1046_v54  ;;  %v2954_v23 = vld [vmem:[%s5423_s3 + $0x28] sm:$0xf0]  ;;  %v4600_v35 = vpop.permute.xlu1 %1267 }
 0x39e   :  { %v2957_v57 = vor.u32 %v3472_v33, %v2954_v23 }
 0x39f   :  { %5444 = vst [vmem:[#allocation20_spill] sm:$0xff] %v4578_v49  ;;  %3135 = vmatmul.msk.bf16.gmra.mxu1 %vm871_vm1, %v2949_v52  ;;  %v1195_v27 = vpop.f32.mrf.mxu2 }
 0x3a4   :  { %v4583_v16 = vpop.f32.mrf.mxu1 }
 0x3a5   :  { %5446 = vst [vmem:[#allocation22_spill] sm:$0xff] %v4583_v16  ;;  %v4612_v23 = vpop.permute.xlu1 %1377 }
 0x3ac   :  { %v1051_v54 = vpop.f32.mrf.mxu1 }
 0x3ad   :  { %v4595_v52 = vadd.f32 %v1185_v30, %v1051_v54  ;;  %v2962_v30 = vld [vmem:[%s5423_s3 + $0x38] sm:$0xf0] }
 0x3ae   :  { %v2965_v54 = vor.u32 %v3474_v11, %v2962_v30  ;;  %v3476_v11 = vld [vmem:[%s5423_s3 + $0x44] sm:$0xf] }
 0x3af   :  { %5447 = vst [vmem:[#allocation23_spill] sm:$0xff] %v4595_v52  ;;  %3136 = vmatmul.msk.bf16.gmra.mxu1 %vm871_vm1, %v2957_v57  ;;  %v4614_v57 = vpop.permute.xlu2 %1382 }
 0x3b4   :  { %v1053_v16 = vpop.f32.mrf.mxu1 }
 0x3b5   :  { %v1188_v33 = vadd.f32 %v1187_v56, %v1053_v16  ;;  %v1373_v56 = vpop.permute.xlu1 %1372 }
 0x3b7   :  { %v1229_v49 = vmax.f32 %v4390_v0, %v1188_v33  ;;  %v1358_v15 = vpop.permute.xlu2 %1357 }
 0x3b9   :  { %v1404_v40 = vadd.f32 %v1338_v38, %v1229_v49  ;;  %v1388_v38 = vpop.permute.xlu0 %1387  ;;  %v1197_v49 = vpop.f32.mrf.mxu2 }
 0x3bc   :  { %v1056_v52 = vpop.f32.mrf.mxu1 }
 0x3bd   :  { %v1191_v36 = vadd.f32 %v1190_v46, %v1056_v52 }
 0x3bf   :  { %v1230_v13 = vmax.f32 %v4392_v39, %v1191_v36  ;;  %3137 = vmatmul.msk.bf16.gmra.mxu1 %vm871_vm1, %v2965_v54  ;;  %v2970_v36 = vld [vmem:[%s5423_s3 + $0x48] sm:$0xf0] }
 0x3c0   :  { %v2973_v39 = vor.u32 %v3476_v11, %v2970_v36 }
 0x3c1   :  { %v1405_v26 = vadd.f32 %v1343_v55, %v1230_v13  ;;  %v1353_v55 = vpop.permute.xlu2 %1352  ;;  %v1368_v63 = vpop.permute.xlu0 %1367 }
 0x3c3   :  { %v1485_v37 = vpack.c.bf16 %v1405_v26, %v1404_v40  ;;  %v1348_v40 = vpop.permute.xlu1 %1347 }
 0x3c4   :  { %v1058_v16 = vpop.f32.mrf.mxu1 }
 0x3c5   :  { %2255 = vmatpush.bf16.msrb.mxu3 %v1485_v37  ;;  %v1193_v0 = vadd.f32 %v1192_v47, %v1058_v16  ;;  %v3478_v47 = vld [vmem:[%s5423_s3 + $0x54] sm:$0xf] }
 0x3c7   :  { %v1231_v46 = vmax.f32 %v4407_v21, %v1193_v0 }
 0x3c9   :  { %v1406_v52 = vadd.f32 %v1348_v40, %v1231_v46 }
 0x3cc   :  { %v1061_v13 = vpop.f32.mrf.mxu1 }
 0x3cd   :  { %v1196_v26 = vadd.f32 %v1195_v27, %v1061_v13  ;;  %v2978_v27 = vld [vmem:[%s5423_s3 + $0x58] sm:$0xf0]  ;;  %v1363_v13 = vpop.permute.xlu0 %1362 }
 0x3ce   :  { %v2981_v16 = vor.u32 %v3478_v47, %v2978_v27 }
 0x3cf   :  { %v1232_v37 = vmax.f32 %v4409_v12, %v1196_v26  ;;  %3138 = vmatmul.msk.bf16.gmra.mxu1 %vm871_vm1, %v2973_v39  ;;  %v1200_v12 = vpop.f32.mrf.mxu2 }
 0x3d1   :  { %v1407_v30 = vadd.f32 %v1353_v55, %v1232_v37  ;;  %v1205_v55 = vpop.f32.mrf.mxu3 }
 0x3d3   :  { %v4630_v33 = vpack.c.bf16 %v1407_v30, %v1406_v52 }
 0x3d4   :  { %v1063_v54 = vpop.f32.mrf.mxu1 }
 0x3d5   :  { %v1198_v21 = vadd.f32 %v1197_v49, %v1063_v54  ;;  %v3480_v49 = vld [vmem:[%s5423_s3 + $0x64] sm:$0xf] }
 0x3d7   :  { %v1233_v36 = vmax.f32 %v4424_v22, %v1198_v21  ;;  %v1202_v52 = vpop.f32.mrf.mxu2  ;;  %v2986_v22 = vld [vmem:[%s5423_s3 + $0x68] sm:$0xf0]  ;;  %s2793_s3 = sshll.u32 %s5429_s9, 4  ;;  %s2794_s3 = int_to_ptr.hbm [resolvable:$true] %s2793_s3 }
 0x3d9   :  { %v1408_v46 = vadd.f32 %v1358_v15, %v1233_v36  ;;  %v1207_v27 = vpop.f32.mrf.mxu3 }
 0x3dc   :  { %v1066_v11 = vpop.f32.mrf.mxu1 }
 0x3dd   :  { %v1201_v0 = vadd.f32 %v1200_v12, %v1066_v11 }
 0x3df   :  { %v1234_v39 = vmax.f32 %v4428_v29, %v1201_v0  ;;  %3139 = vmatmul.msk.bf16.gmra.mxu1 %vm871_vm1, %v2981_v16  ;;  %v2989_v29 = vor.u32 %v3480_v49, %v2986_v22 }
 0x3e1   :  { %v1409_v26 = vadd.f32 %v1363_v13, %v1234_v39  ;;  %v1210_v0 = vpop.f32.mrf.mxu3 }
 0x3e3   :  { %v4641_v40 = vpack.c.bf16 %v1409_v26, %v1408_v46  ;;  %v1148_v46 = vadd.f32 %v4426_v28, %v4464_v53  ;;  %v1153_v28 = vadd.f32 %v4445_v2, %v4483_v44 }
 0x3e4   :  { %v1068_v37 = vpop.f32.mrf.mxu1 }
 0x3e5   :  { %v1203_v30 = vadd.f32 %v1202_v52, %v1068_v37 }
 0x3e7   :  { %v1235_v47 = vmax.f32 %v4443_v42, %v1203_v30 }
 0x3e9   :  { %v1410_v12 = vadd.f32 %v1368_v63, %v1235_v47  ;;  %v1212_v52 = vpop.f32.mrf.mxu3  ;;  %v1158_v47 = vadd.f32 %v4466_v43, %v4502_v31  ;;  %v1163_v31 = vadd.f32 %v4485_v10, %v4521_v62 }
 0x3ec   :  { %v1071_v54 = vpop.f32.mrf.mxu1 }
 0x3ed   :  { %v1206_v15 = vadd.f32 %v1205_v55, %v1071_v54 }
 0x3ef   :  { %v1236_v21 = vmax.f32 %v4447_v58, %v1206_v15  ;;  %3140 = vmatmul.msk.bf16.gmra.mxu1 %vm871_vm1, %v2989_v29 }
 0x3f1   :  { %v1411_v16 = vadd.f32 %v1373_v56, %v1236_v21 }
 0x3f3   :  { %v4652_v11 = vpack.c.bf16 %v1411_v16, %v1410_v12 }
 0x3f4   :  { %v1073_v36 = vpop.f32.mrf.mxu1 }
 0x3f5   :  { %v1208_v39 = vadd.f32 %v1207_v27, %v1073_v36 }
 0x3f7   :  { %v1237_v26 = vmax.f32 %v4462_v48, %v1208_v39 }
 0x3f9   :  { %v1412_v55 = vadd.f32 %v4612_v23, %v1237_v26 }
 0x3fc   :  { %v1076_v13 = vpop.f32.mrf.mxu1 }
 0x3fd   :  { %v1211_v42 = vadd.f32 %v1210_v0, %v1076_v13 }
 0x3ff   :  { %v1238_v37 = vmax.f32 %v1148_v46, %v1211_v42  ;;  %v1168_v46 = vadd.f32 %v4516_v6, %v4533_v50 }
 0x401   :  { %v1413_v58 = vadd.f32 %v4614_v57, %v1238_v37 }
 0x403   :  { %v4659_v63 = vpack.c.bf16 %v1413_v58, %v1412_v55  ;;  %v5449_v55 = vld [vmem:[#allocation11_spill] sm:$0xff] }
 0x404   :  { %v1078_v56 = vpop.f32.mrf.mxu1  ;;  %v1173_v58 = vadd.f32 %v5449_v55, %v4545_v14  ;;  %v5457_v14 = vld [vmem:[#allocation8_spill] sm:$0xff]  ;;  %v3163_v55 = vld [vmem:[%s5425_s5 + $0x8] sm:$0xf0] }
 0x405   :  { %v1213_v49 = vadd.f32 %v1212_v52, %v1078_v56  ;;  %v5451_v56 = vld [vmem:[#allocation15_spill] sm:$0xff] }
 0x407   :  { %v1239_v22 = vmax.f32 %v4481_v45, %v1213_v49 }
 0x409   :  { %v1414_v30 = vadd.f32 %v1388_v38, %v1239_v22 }
 0x40b   :  { %v1490_v29 = vpack.c.bf16 %v1414_v30, %v1414_v30 }
 0x40c   :  { %v1090_v54 = vpop.f32.mrf.mxu1 }
 0x40d   :  { %v1091_v48 = vadd.f32 %v1090_v54, %v4271_v51  ;;  %v4665_v53 = vsel %vm2251_vm2, %v1490_v29, 0 }
 0x40e   :  { %2426 = vmatpush.bf16.msrb.mxu0 %v4665_v53  ;;  %3584 = vmatpush.bf16.msrb.mxu2 %v4665_v53 }
 0x40f   :  { %v1215_v23 = vmax.f32 %v1091_v48, %v1153_v28  ;;  %v5455_v28 = vld [vmem:[#allocation18_spill] sm:$0xff]  ;;  %v5456_v48 = vld [vmem:[#allocation12_spill] sm:$0xff] }
 0x411   :  { %v4676_v2 = vadd.f32 %v4600_v35, %v1215_v23 }
 0x412   :  { %2427 = vmatpush.bf16.msrb.mxu0 %v4659_v63  ;;  %3586 = vmatpush.bf16.msrb.mxu2 %v4659_v63 }
 0x414   :  { %v1092_v45 = vpop.f32.mrf.mxu1 }
 0x415   :  { %v1093_v57 = vadd.f32 %v1092_v45, %v4273_v1 }
 0x416   :  { %2428 = vmatpush.bf16.msrb.mxu0 %v4652_v11  ;;  %3588 = vmatpush.bf16.msrb.mxu2 %v4652_v11 }
 0x417   :  { %v1216_v51 = vmax.f32 %v1093_v57, %v4500_v41 }
 0x419   :  { %v4679_v44 = vadd.f32 %v4602_v61, %v1216_v51  ;;  %v5458_v51 = vld [vmem:[#allocation20_spill] sm:$0xff] }
 0x41a   :  { %2429 = vmatpush.bf16.msrb.mxu0 %v4641_v40  ;;  %3590 = vmatpush.bf16.msrb.mxu2 %v4641_v40 }
 0x41b   :  { %v1478_v38 = vpack.c.bf16 %v4679_v44, %v4676_v2  ;;  %v3169_v44 = vld [vmem:[%s5425_s5 + $0x10] sm:$0xf] }
 0x41c   :  { %v1095_v1 = vpop.f32.mrf.mxu1 }
 0x41d   :  { %v1096_v15 = vadd.f32 %v1095_v1, %v4288_v5 }
 0x41e   :  { %2430 = vmatpush.bf16.msrb.mxu0 %v4630_v33  ;;  %3592 = vmatpush.bf16.msrb.mxu2 %v4630_v33 }
 0x41f   :  { %v1217_v41 = vmax.f32 %v1096_v15, %v1158_v47  ;;  %v5459_v47 = vld [vmem:[#allocation21_spill] sm:$0xff] }
 0x421   :  { %v4693_v21 = vadd.f32 %v4587_v20, %v1217_v41  ;;  %v5460_v41 = vld [vmem:[#allocation16_spill] sm:$0xff] }
 0x424   :  { %v1097_v61 = vpop.f32.mrf.mxu1 }
 0x425   :  { %v1098_v35 = vadd.f32 %v1097_v61, %v4290_v7 }
 0x427   :  { %v1218_v27 = vmax.f32 %v1098_v35, %v4519_v60 }
 0x429   :  { %v4696_v12 = vadd.f32 %v4619_v32, %v1218_v27 }
 0x42b   :  { %v1479_v43 = vpack.c.bf16 %v4696_v12, %v4693_v21  ;;  %v3548_v21 = vld [vmem:[%s5425_s5 + $0xf4] sm:$0xf]  ;;  %v3283_v12 = vld [vmem:[%s5425_s5 + $0xf8] sm:$0xf0] }
 0x42c   :  { %v1100_v5 = vpop.f32.mrf.mxu1 }
 0x42d   :  { %v1101_v16 = vadd.f32 %v1100_v5, %v4305_v8  ;;  %v5461_v5 = vld [vmem:[#allocation9_spill] sm:$0xff] }
 0x42f   :  { %v1219_v36 = vmax.f32 %v1101_v16, %v1163_v31  ;;  %v5462_v16 = vld [vmem:[#allocation22_spill] sm:$0xff] }
 0x431   :  { %v1394_v20 = vadd.f32 %v4604_v59, %v1219_v36  ;;  %v5463_v36 = vld [vmem:[#allocation19_spill] sm:$0xff] }
 0x434   :  { %v1102_v0 = vpop.f32.mrf.mxu1 }
 0x435   :  { %v1103_v7 = vadd.f32 %v1102_v0, %v4307_v9  ;;  %v1183_v0 = vadd.f32 %v5463_v36, %v5462_v16  ;;  %v3556_v36 = vld [vmem:[%s5425_s5 + $0x134] sm:$0xf] }
 0x437   :  { %v1220_v60 = vmax.f32 %v1103_v7, %v4531_v3 }
 0x439   :  { %v1395_v32 = vadd.f32 %v4585_v19, %v1220_v60 }
 0x43b   :  { %v1480_v39 = vpack.c.bf16 %v1395_v32, %v1394_v20  ;;  %v5464_v20 = vld [vmem:[#allocation10_spill] sm:$0xff] }
 0x43c   :  { %v1105_v13 = vpop.f32.mrf.mxu1 }
 0x43d   :  { %v1106_v26 = vadd.f32 %v1105_v13, %v4322_v17  ;;  %v5450_v17 = vld [vmem:[#allocation6_spill] sm:$0xff]  ;;  %v5465_v13 = vld [vmem:[#allocation23_spill] sm:$0xff] }
 0x43f   :  { %v1221_v10 = vmax.f32 %v1106_v26, %v1168_v46  ;;  %v5466_v26 = vld [vmem:[#allocation13_spill] sm:$0xff] }
 0x441   :  { %v1396_v9 = vadd.f32 %v4574_v4, %v1221_v10 }
 0x444   :  { %v1107_v62 = vpop.f32.mrf.mxu1 }
 0x445   :  { %v1108_v8 = vadd.f32 %v1107_v62, %v4324_v18  ;;  %v5452_v18 = vld [vmem:[#allocation17_spill] sm:$0xff]  ;;  %v5467_v62 = vld [vmem:[#allocation14_spill] sm:$0xff] }
 0x447   :  { %v1222_v42 = vmax.f32 %v1108_v8, %v4541_v25  ;;  %v5453_v25 = vld [vmem:[#allocation24_spill] sm:$0xff] }
 0x449   :  { %v1397_v3 = vadd.f32 %v4576_v34, %v1222_v42  ;;  %v5454_v34 = vld [vmem:[#allocation7_spill] sm:$0xff] }
 0x44a   :  { %v3544_v42 = vld [vmem:[%s5425_s5 + $0xd4] sm:$0xf] }
 0x44b   :  { %v1481_v59 = vpack.c.bf16 %v1397_v3, %v1396_v9  ;;  %v3267_v9 = vld [vmem:[%s5425_s5 + $0xd8] sm:$0xf0] }
 0x44c   :  { %v1110_v37 = vpop.f32.mrf.mxu1  ;;  %v3270_v3 = vor.u32 %v3544_v42, %v3267_v9  ;;  %v3532_v42 = vld [vmem:[%s5425_s5 + $0x74] sm:$0xf]  ;;  %v3219_v9 = vld [vmem:[%s5425_s5 + $0x78] sm:$0xf0] }
 0x44d   :  { %v1111_v19 = vadd.f32 %v1110_v37, %v4339_v24  ;;  %v1178_v24 = vadd.f32 %v5456_v48, %v5455_v28  ;;  %v3552_v28 = vld [vmem:[%s5425_s5 + $0x114] sm:$0xf]  ;;  %v3299_v48 = vld [vmem:[%s5425_s5 + $0x118] sm:$0xf0] }
 0x44e   :  { %3420 = vmatmul.msk.bf16.vlgmr.msrb.gmra.mxu2 %vm2154_vm3, %v3270_v3  ;;  %v3222_v3 = vor.u32 %v3532_v42, %v3219_v9  ;;  %v3540_v42 = vld [vmem:[%s5425_s5 + $0xb4] sm:$0xf]  ;;  %v3251_v9 = vld [vmem:[%s5425_s5 + $0xb8] sm:$0xf0] }
 0x44f   :  { %v1223_v50 = vmax.f32 %v1111_v19, %v1173_v58  ;;  %v3518_v19 = vld [vmem:[%s5425_s5 + $0x4] sm:$0xf] }
 0x450   :  { %v3166_v58 = vor.u32 %v3518_v19, %v3163_v55  ;;  %v3531_v19 = vld [vmem:[%s5425_s5 + $0x64] sm:$0xf0] }
 0x451   :  { %v1398_v22 = vadd.f32 %v5452_v18, %v1223_v50  ;;  %v3275_v50 = vld [vmem:[%s5425_s5 + $0xe8] sm:$0xf0]  ;;  %v3519_v18 = vld [vmem:[%s5425_s5 + $0x4] sm:$0xf0] }
 0x452   :  { %3407 = vmatmul.msk.bf16.vlgmr.msrb.gmra.mxu0 %vm2154_vm3, %v3166_v58  ;;  %v3560_v58 = vld [vmem:[%s5425_s5 + $0x154] sm:$0xf] }
 0x454   :  { %v1112_v6 = vpop.f32.mrf.mxu1 }
 0x455   :  { %v1113_v52 = vadd.f32 %v1112_v6, %v5450_v17  ;;  %v3546_v6 = vld [vmem:[%s5425_s5 + $0xe4] sm:$0xf] }
 0x456   :  { %v3278_v17 = vor.u32 %v3546_v6, %v3275_v50  ;;  %v3331_v6 = vld [vmem:[%s5425_s5 + $0x158] sm:$0xf0] }
 0x457   :  { %v1224_v49 = vmax.f32 %v1113_v52, %v5451_v56  ;;  %v3520_v52 = vld [vmem:[%s5425_s5 + $0x14] sm:$0xf]  ;;  %v3171_v56 = vld [vmem:[%s5425_s5 + $0x18] sm:$0xf0]  ;;  %v3334_v50 = vor.u32 %v3560_v58, %v3331_v6 }
 0x459   :  { %v1399_v30 = vadd.f32 %v5453_v25, %v1224_v49  ;;  %v3174_v49 = vor.u32 %v3520_v52, %v3171_v56  ;;  %v3291_v25 = vld [vmem:[%s5425_s5 + $0x108] sm:$0xf0]  ;;  %v3534_v52 = vld [vmem:[%s5425_s5 + $0x84] sm:$0xf] }
 0x45a   :  { %v3227_v56 = vld [vmem:[%s5425_s5 + $0x88] sm:$0xf0] }
 0x45b   :  { %v1482_v4 = vpack.c.bf16 %v1399_v30, %v1398_v22 }
 0x45c   :  { %v1115_v29 = vpop.f32.mrf.mxu1 }
 0x45d   :  { %v1116_v54 = vadd.f32 %v1115_v29, %v5454_v34  ;;  %v3177_v29 = vld [vmem:[%s5425_s5 + $0x20] sm:$0xf]  ;;  %v3523_v34 = vld [vmem:[%s5425_s5 + $0x24] sm:$0xf0] }
 0x45e   :  { %3421 = vmatmul.msk.bf16.gmra.mxu2 %vm2154_vm3, %v3278_v17 }
 0x45f   :  { %v1225_v45 = vmax.f32 %v1116_v54, %v1178_v24  ;;  %v3178_v54 = vor.u32 %v3523_v34, %v3177_v29  ;;  %v3302_v24 = vor.u32 %v3552_v28, %v3299_v48  ;;  %v3564_v34 = vld [vmem:[%s5425_s5 + $0x174] sm:$0xf]  ;;  %v1557_v48 = vpop.permute.xlu0 %1556 }
 0x461   :  { %v1400_v15 = vadd.f32 %v5459_v47, %v1225_v45  ;;  %v3195_v45 = vld [vmem:[%s5425_s5 + $0x48] sm:$0xf0]  ;;  %v3554_v47 = vld [vmem:[%s5425_s5 + $0x124] sm:$0xf] }
 0x462   :  { %3408 = vmatmul.msk.bf16.gmra.mxu0 %vm2154_vm3, %v3174_v49 }
 0x464   :  { %v1117_v23 = vpop.f32.mrf.mxu1 }
 0x465   :  { %v1118_v57 = vadd.f32 %v1117_v23, %v5457_v14  ;;  %v3526_v23 = vld [vmem:[%s5425_s5 + $0x44] sm:$0xf] }
 0x466   :  { %v3198_v14 = vor.u32 %v3526_v23, %v3195_v45 }
 0x467   :  { %v1226_v1 = vmax.f32 %v1118_v57, %v5458_v51  ;;  %v3185_v57 = vld [vmem:[%s5425_s5 + $0x30] sm:$0xf]  ;;  %v3525_v51 = vld [vmem:[%s5425_s5 + $0x34] sm:$0xf0]  ;;  %v1572_v58 = vpop.permute.xlu0 %1571 }
 0x469   :  { %v1401_v61 = vadd.f32 %v5460_v41, %v1226_v1  ;;  %v3186_v1 = vor.u32 %v3525_v51, %v3185_v57  ;;  %v3538_v57 = vld [vmem:[%s5425_s5 + $0xa4] sm:$0xf]  ;;  %v3243_v51 = vld [vmem:[%s5425_s5 + $0xa8] sm:$0xf0] }
 0x46b   :  { %v1483_v35 = vpack.c.bf16 %v1401_v61, %v1400_v15  ;;  %v3307_v15 = vld [vmem:[%s5425_s5 + $0x128] sm:$0xf0]  ;;  %v3528_v61 = vld [vmem:[%s5425_s5 + $0x54] sm:$0xf] }
 0x46c   :  { %v1120_v27 = vpop.f32.mrf.mxu1  ;;  %v3310_v41 = vor.u32 %v3554_v47, %v3307_v15  ;;  %v3246_v47 = vor.u32 %v3538_v57, %v3243_v51  ;;  %v3233_v15 = vld [vmem:[%s5425_s5 + $0x90] sm:$0xf] }
 0x46d   :  { %v1121_v31 = vadd.f32 %v1120_v27, %v5461_v5  ;;  %v3193_v5 = vld [vmem:[%s5425_s5 + $0x40] sm:$0xf] }
 0x46f   :  { %v1227_v60 = vmax.f32 %v1121_v31, %v1183_v0  ;;  %v3527_v31 = vld [vmem:[%s5425_s5 + $0x44] sm:$0xf0]  ;;  %v3315_v0 = vld [vmem:[%s5425_s5 + $0x138] sm:$0xf0] }
 0x470   :  { %v3194_v16 = vor.u32 %v3527_v31, %v3193_v5 }
 0x471   :  { %v1402_v10 = vadd.f32 %v5466_v26, %v1227_v60  ;;  %v3530_v60 = vld [vmem:[%s5425_s5 + $0x64] sm:$0xf] }
 0x474   :  { %v1122_v7 = vpop.f32.mrf.mxu1 }
 0x475   :  { %v1123_v32 = vadd.f32 %v1122_v7, %v5464_v20  ;;  %v3318_v7 = vor.u32 %v3556_v36, %v3315_v0  ;;  %v3211_v20 = vld [vmem:[%s5425_s5 + $0x68] sm:$0xf0] }
 0x477   :  { %v1228_v46 = vmax.f32 %v1123_v32, %v5465_v13  ;;  %v3214_v32 = vor.u32 %v3530_v60, %v3211_v20  ;;  %v3201_v13 = vld [vmem:[%s5425_s5 + $0x50] sm:$0xf]  ;;  %v3566_v60 = vld [vmem:[%s5425_s5 + $0x184] sm:$0xf]  ;;  %v3355_v20 = vld [vmem:[%s5425_s5 + $0x188] sm:$0xf0] }
 0x479   :  { %v1403_v8 = vadd.f32 %v5467_v62, %v1228_v46  ;;  %v3529_v46 = vld [vmem:[%s5425_s5 + $0x54] sm:$0xf0]  ;;  %v3323_v62 = vld [vmem:[%s5425_s5 + $0x148] sm:$0xf0] }
 0x47a   :  { %v3202_v26 = vor.u32 %v3529_v46, %v3201_v13  ;;  %v1567_v46 = vpop.permute.xlu2 %1566 }
 0x47b   :  { %v1484_v37 = vpack.c.bf16 %v1403_v8, %v1402_v10  ;;  %v3558_v10 = vld [vmem:[%s5425_s5 + $0x144] sm:$0xf] }
 0x47c   :  { %v3326_v8 = vor.u32 %v3558_v10, %v3323_v62 }
 0x47d   :  { %2256 = vmatpush.bf16.msrb.mxu3 %v1484_v37  ;;  %v3209_v37 = vld [vmem:[%s5425_s5 + $0x60] sm:$0xf] }
 0x47e   :  { %v3210_v55 = vor.u32 %v3531_v19, %v3209_v37  ;;  %v3254_v37 = vor.u32 %v3540_v42, %v3251_v9  ;;  %v3241_v19 = vld [vmem:[%s5425_s5 + $0xa0] sm:$0xf] }
 0x481   :  { %2257 = vmatpush.bf16.msrb.mxu3 %v1483_v35  ;;  %v3203_v35 = vld [vmem:[%s5425_s5 + $0x58] sm:$0xf0] }
 0x482   :  { %v3206_v27 = vor.u32 %v3528_v61, %v3203_v35  ;;  %v1562_v61 = vpop.permute.xlu1 %1561 }
 0x485   :  { %2258 = vmatpush.bf16.msrb.mxu3 %v1482_v4  ;;  %v3524_v4 = vld [vmem:[%s5425_s5 + $0x34] sm:$0xf] }
 0x489   :  { %2259 = vmatpush.bf16.msrb.mxu3 %v1481_v59  ;;  %v3161_v59 = vld [vmem:[%s5425_s5] sm:$0xf] }
 0x48a   :  { %v3162_v22 = vor.u32 %v3519_v18, %v3161_v59  ;;  %v3230_v59 = vor.u32 %v3534_v52, %v3227_v56  ;;  %v3217_v18 = vld [vmem:[%s5425_s5 + $0x70] sm:$0xf] }
 0x48d   :  { %2260 = vmatpush.bf16.msrb.mxu3 %v1480_v39  ;;  %v3522_v39 = vld [vmem:[%s5425_s5 + $0x24] sm:$0xf] }
 0x491   :  { %2261 = vmatpush.bf16.msrb.mxu3 %v1479_v43  ;;  %v3286_v43 = vor.u32 %v3548_v21, %v3283_v12 }
 0x493   :  { %3422 = vmatmul.msk.bf16.gmra.mxu2 %vm2154_vm3, %v3286_v43 }
 0x495   :  { %2262 = vmatpush.bf16.msrb.mxu3 %v1478_v38 }
 0x498   :  { %2263 = vmatmul.bf16.vlgmr.msrb.gmra.mxu3 %v3162_v22  ;;  %v3533_v22 = vld [vmem:[%s5425_s5 + $0x74] sm:$0xf0] }
 0x499   :  { %3585 = vmatpush.bf16.msra.mxu3 %v4665_v53  ;;  %v3179_v53 = vld [vmem:[%s5425_s5 + $0x28] sm:$0xf0]  ;;  %v3218_v21 = vor.u32 %v3533_v22, %v3217_v18 }
 0x49a   :  { %v3182_v2 = vor.u32 %v3522_v39, %v3179_v53  ;;  %v3562_v39 = vld [vmem:[%s5425_s5 + $0x164] sm:$0xf]  ;;  %v3339_v53 = vld [vmem:[%s5425_s5 + $0x168] sm:$0xf0] }
 0x49c   :  { %3409 = vmatmul.msk.bf16.gmra.mxu0 %vm2154_vm3, %v3182_v2  ;;  %v3342_v2 = vor.u32 %v3562_v39, %v3339_v53 }
 0x49d   :  { %3587 = vmatpush.bf16.msra.mxu3 %v4659_v63  ;;  %v3521_v63 = vld [vmem:[%s5425_s5 + $0x14] sm:$0xf0] }
 0x49e   :  { %v3170_v38 = vor.u32 %v3521_v63, %v3169_v44  ;;  %v3536_v63 = vld [vmem:[%s5425_s5 + $0x94] sm:$0xf] }
 0x4a1   :  { %3589 = vmatpush.bf16.msra.mxu3 %v4652_v11  ;;  %v3550_v11 = vld [vmem:[%s5425_s5 + $0x104] sm:$0xf] }
 0x4a2   :  { %v3294_v30 = vor.u32 %v3550_v11, %v3291_v25 }
 0x4a4   :  { %3423 = vmatmul.msk.bf16.gmra.mxu2 %vm2154_vm3, %v3294_v30  ;;  %v3225_v30 = vld [vmem:[%s5425_s5 + $0x80] sm:$0xf] }
 0x4a5   :  { %3591 = vmatpush.bf16.msra.mxu3 %v4641_v40  ;;  %v3187_v40 = vld [vmem:[%s5425_s5 + $0x38] sm:$0xf0] }
 0x4a8   :  { %2268 = vmatmul.bf16.gmra.mxu3 %v3170_v38  ;;  %v3235_v38 = vld [vmem:[%s5425_s5 + $0x98] sm:$0xf0] }
 0x4a9   :  { %3593 = vmatpush.bf16.msra.mxu3 %v4630_v33  ;;  %v3190_v33 = vor.u32 %v3524_v4, %v3187_v40  ;;  %v3238_v25 = vor.u32 %v3536_v63, %v3235_v38  ;;  %v3535_v4 = vld [vmem:[%s5425_s5 + $0x84] sm:$0xf0] }
 0x4aa   :  { %v3226_v40 = vor.u32 %v3535_v4, %v3225_v30  ;;  %v3542_v30 = vld [vmem:[%s5425_s5 + $0xc4] sm:$0xf]  ;;  %v3259_v4 = vld [vmem:[%s5425_s5 + $0xc8] sm:$0xf0] }
 0x4ac   :  { %3410 = vmatmul.msk.bf16.gmra.mxu0 %vm2154_vm3, %v3190_v33 }
 0x4b4   :  { %3424 = vmatmul.msk.bf16.gmra.mxu2 %vm2154_vm3, %v3302_v24 }
 0x4b8   :  { %2273 = vmatmul.bf16.gmra.mxu3 %v3178_v54  ;;  %v3347_v54 = vld [vmem:[%s5425_s5 + $0x178] sm:$0xf0] }
 0x4b9   :  { %v3350_v28 = vor.u32 %v3564_v34, %v3347_v54  ;;  %v3249_v34 = vld [vmem:[%s5425_s5 + $0xb0] sm:$0xf]  ;;  %v3541_v54 = vld [vmem:[%s5425_s5 + $0xb4] sm:$0xf0] }
 0x4bc   :  { %3411 = vmatmul.msk.bf16.gmra.mxu0 %vm2154_vm3, %v3198_v14 }
 0x4c4   :  { %3425 = vmatmul.msk.bf16.gmra.mxu2 %vm2154_vm3, %v3310_v41  ;;  %v3537_v41 = vld [vmem:[%s5425_s5 + $0x94] sm:$0xf0] }
 0x4c5   :  { %v3234_v5 = vor.u32 %v3537_v41, %v3233_v15  ;;  %v3570_v15 = vld [vmem:[%s5425_s5 + $0x1a4] sm:$0xf]  ;;  %v3371_v41 = vld [vmem:[%s5425_s5 + $0x1a8] sm:$0xf0] }
 0x4c8   :  { %2278 = vmatmul.bf16.gmra.mxu3 %v3186_v1 }
 0x4cc   :  { %3412 = vmatmul.msk.bf16.gmra.mxu0 %vm2154_vm3, %v3206_v27 }
 0x4cf   :  { %v2432_v17 = vpop.f32.mrf.mxu0 }
 0x4d1   :  { %v4913_v49 = vpop.f32.mrf.mxu2 }
 0x4d4   :  { %3426 = vmatmul.msk.bf16.gmra.mxu2 %vm2154_vm3, %v3318_v7 }
 0x4d7   :  { %v2434_v12 = vpop.f32.mrf.mxu0 }
 0x4d8   :  { %2283 = vmatmul.bf16.gmra.mxu3 %v3194_v16 }
 0x4d9   :  { %v4922_v43 = vpop.f32.mrf.mxu2 }
 0x4dc   :  { %3413 = vmatmul.msk.bf16.gmra.mxu0 %vm2154_vm3, %v3214_v32  ;;  %v3358_v32 = vor.u32 %v3566_v60, %v3355_v20  ;;  %v3543_v60 = vld [vmem:[%s5425_s5 + $0xc4] sm:$0xf0] }
 0x4df   :  { %v2437_v44 = vpop.f32.mrf.mxu0 }
 0x4e1   :  { %v4937_v11 = vpop.f32.mrf.mxu2 }
 0x4e4   :  { %3427 = vmatmul.msk.bf16.gmra.mxu2 %vm2154_vm3, %v3326_v8 }
 0x4e7   :  { %v2439_v33 = vpop.f32.mrf.mxu0 }
 0x4e8   :  { %2288 = vmatmul.bf16.gmra.mxu3 %v3202_v26 }
 0x4e9   :  { %v4946_v29 = vpop.f32.mrf.mxu2 }
 0x4ec   :  { %3414 = vmatmul.msk.bf16.gmra.mxu0 %vm2154_vm3, %v3222_v3 }
 0x4f4   :  { %3428 = vmatmul.msk.bf16.gmra.mxu2 %vm2154_vm3, %v3334_v50 }
 0x4f8   :  { %2293 = vmatmul.bf16.gmra.mxu3 %v3210_v55  ;;  %v3539_v55 = vld [vmem:[%s5425_s5 + $0xa4] sm:$0xf0] }
 0x4fc   :  { %3415 = vmatmul.msk.bf16.gmra.mxu0 %vm2154_vm3, %v3230_v59 }
 0x504   :  { %3429 = vmatmul.msk.bf16.gmra.mxu2 %vm2154_vm3, %v3342_v2  ;;  %v1577_v2 = vpop.permute.xlu1 %1576 }
 0x508   :  { %2298 = vmatmul.bf16.gmra.mxu3 %v3218_v21  ;;  %v3568_v21 = vld [vmem:[%s5425_s5 + $0x194] sm:$0xf] }
 0x50c   :  { %3416 = vmatmul.msk.bf16.gmra.mxu0 %vm2154_vm3, %v3238_v25 }
 0x514   :  { %3430 = vmatmul.msk.bf16.gmra.mxu2 %vm2154_vm3, %v3350_v28  ;;  %v1582_v28 = vpop.permute.xlu2 %1581 }
 0x516   :  { %v4961_v1 = vpop.f32.mrf.mxu2 }
 0x518   :  { %2303 = vmatmul.bf16.gmra.mxu3 %v3226_v40 }
 0x519   :  { %v2442_v14 = vpop.f32.mrf.mxu0 }
 0x51b   :  { %v2264_v24 = vpop.f32.mrf.mxu3 }
 0x51c   :  { %v2265_v23 = vadd.f32 %v2264_v24, %v1557_v48  ;;  %3417 = vmatmul.msk.bf16.gmra.mxu0 %vm2154_vm3, %v3246_v47 }
 0x51e   :  { %v2433_v45 = vadd.f32 %v2432_v17, %v2265_v23  ;;  %v4970_v36 = vpop.f32.mrf.mxu2  ;;  %v3242_v17 = vor.u32 %v3539_v55, %v3241_v19  ;;  %v3250_v23 = vor.u32 %v3541_v54, %v3249_v34  ;;  %v3379_v19 = vld [vmem:[%s5425_s5 + $0x1b8] sm:$0xf0]  ;;  %v1597_v55 = vpop.permute.xlu2 %1596  ;;  %v3273_v54 = vld [vmem:[%s5425_s5 + $0xe0] sm:$0xf] }
 0x520   :  { %v2591_v0 = vmax.f32 %v2433_v45, 0.0 }
 0x521   :  { %v2444_v16 = vpop.f32.mrf.mxu0 }
 0x523   :  { %v2266_v35 = vpop.f32.mrf.mxu3 }
 0x524   :  { %v2267_v27 = vadd.f32 %v2266_v35, %v1562_v61  ;;  %3431 = vmatmul.msk.bf16.gmra.mxu2 %vm2154_vm3, %v3358_v32  ;;  %v3374_v35 = vor.u32 %v3570_v15, %v3371_v41  ;;  %v1592_v32 = vpop.permute.xlu1 %1591  ;;  %v3395_v15 = vld [vmem:[%s5425_s5 + $0x1d8] sm:$0xf0] }
 0x526   :  { %v2435_v31 = vadd.f32 %v2434_v12, %v2267_v27  ;;  %v3363_v12 = vld [vmem:[%s5425_s5 + $0x198] sm:$0xf0]  ;;  %v1587_v27 = vpop.permute.xlu0 %1586 }
 0x527   :  { %v4987_v3 = vpop.f32.mrf.mxu2  ;;  %v3366_v53 = vor.u32 %v3568_v21, %v3363_v12  ;;  %v3545_v21 = vld [vmem:[%s5425_s5 + $0xd4] sm:$0xf0] }
 0x528   :  { %v2592_v7 = vmax.f32 %v2435_v31, 0.0  ;;  %2308 = vmatmul.bf16.gmra.mxu3 %v3234_v5 }
 0x529   :  { %v2447_v8 = vpop.f32.mrf.mxu0 }
 0x52a   :  { %v4978_v13 = vpack.c.bf16 %v2592_v7, %v2591_v0  ;;  %v3257_v7 = vld [vmem:[%s5425_s5 + $0xc0] sm:$0xf] }
 0x52b   :  { %v2269_v26 = vpop.f32.mrf.mxu3 }
 0x52c   :  { %v2270_v10 = vadd.f32 %v2269_v26, %v1567_v46  ;;  %3418 = vmatmul.msk.bf16.gmra.mxu0 %vm2154_vm3, %v3254_v37  ;;  %v3572_v37 = vld [vmem:[%s5425_s5 + $0x1b4] sm:$0xf] }
 0x52e   :  { %v2438_v62 = vadd.f32 %v2437_v44, %v2270_v10  ;;  %v3258_v10 = vor.u32 %v3543_v60, %v3257_v7  ;;  %v3281_v7 = vld [vmem:[%s5425_s5 + $0xf0] sm:$0xf]  ;;  %v3549_v60 = vld [vmem:[%s5425_s5 + $0xf4] sm:$0xf0] }
 0x52f   :  { %v4996_v59 = vpop.f32.mrf.mxu2 }
 0x530   :  { %v2593_v18 = vmax.f32 %v2438_v62, 0.0 }
 0x531   :  { %v2449_v56 = vpop.f32.mrf.mxu0 }
 0x533   :  { %v2271_v6 = vpop.f32.mrf.mxu3 }
 0x534   :  { %v2272_v50 = vadd.f32 %v2271_v6, %v1572_v58  ;;  %3432 = vmatmul.msk.bf16.gmra.mxu2 %vm2154_vm3, %v3366_v53  ;;  %v3382_v6 = vor.u32 %v3572_v37, %v3379_v19  ;;  %v3578_v37 = vld [vmem:[%s5425_s5 + $0x1e4] sm:$0xf]  ;;  %v3403_v19 = vld [vmem:[%s5425_s5 + $0x1e8] sm:$0xf0] }
 0x536   :  { %v2440_v52 = vadd.f32 %v2439_v33, %v2272_v50  ;;  %v3262_v33 = vor.u32 %v3542_v30, %v3259_v4 }
 0x537   :  { %v5013_v40 = vpop.f32.mrf.mxu2 }
 0x538   :  { %v2594_v22 = vmax.f32 %v2440_v52, 0.0  ;;  %2313 = vmatmul.bf16.gmra.mxu3 %v3242_v17 }
 0x539   :  { %v2452_v25 = vpop.f32.mrf.mxu0 }
 0x53a   :  { %v5004_v39 = vpack.c.bf16 %v2594_v22, %v2593_v18  ;;  %v3265_v22 = vld [vmem:[%s5425_s5 + $0xd0] sm:$0xf] }
 0x53b   :  { %v2274_v44 = vpop.f32.mrf.mxu3  ;;  %v3266_v53 = vor.u32 %v3545_v21, %v3265_v22 }
 0x53c   :  { %v2275_v63 = vadd.f32 %v2274_v44, %v1577_v2  ;;  %3419 = vmatmul.msk.bf16.gmra.mxu0 %vm2154_vm3, %v3262_v33 }
 0x53e   :  { %v2443_v38 = vadd.f32 %v2442_v14, %v2275_v63  ;;  %v1612_v63 = vpop.permute.xlu2 %1611 }
 0x53f   :  { %v5024_v57 = vpop.f32.mrf.mxu2 }
 0x540   :  { %v2595_v51 = vmax.f32 %v2443_v38, 0.0  ;;  %v3574_v38 = vld [vmem:[%s5425_s5 + $0x1c4] sm:$0xf] }
 0x541   :  { %v5022_v14 = vpop.f32.mrf.mxu0 }
 0x543   :  { %v2276_v48 = vpop.f32.mrf.mxu3 }
 0x544   :  { %v2277_v24 = vadd.f32 %v2276_v48, %v1582_v28  ;;  %3433 = vmatmul.msk.bf16.gmra.mxu2 %vm2154_vm3, %v3374_v35  ;;  %v3547_v28 = vld [vmem:[%s5425_s5 + $0xe4] sm:$0xf0] }
 0x546   :  { %v2445_v45 = vadd.f32 %v2444_v16, %v2277_v24  ;;  %v1627_v48 = vpop.permute.xlu2 %1626 }
 0x547   :  { %v5035_v0 = vpop.f32.mrf.mxu2 }
 0x548   :  { %v2596_v47 = vmax.f32 %v2445_v45, 0.0  ;;  %2318 = vmatmul.bf16.gmra.mxu3 %v3250_v23  ;;  %v3274_v23 = vor.u32 %v3547_v28, %v3273_v54 }
 0x549   :  { %v5043_v20 = vpop.f32.mrf.mxu0 }
 0x54a   :  { %v5032_v61 = vpack.c.bf16 %v2596_v47, %v2595_v51  ;;  %v3576_v47 = vld [vmem:[%s5425_s5 + $0x1d4] sm:$0xf] }
 0x54b   :  { %v2279_v5 = vpop.f32.mrf.mxu3  ;;  %v3398_v41 = vor.u32 %v3576_v47, %v3395_v15 }
 0x54c   :  { %v2280_v31 = vadd.f32 %v2279_v5, %v1587_v27  ;;  %v1602_v5 = vpop.permute.xlu0 %1601 }
 0x54e   :  { %v2448_v16 = vadd.f32 %v2447_v8, %v2280_v31  ;;  %v5098_v27 = vpop.permute.xlu2 %1641  ;;  %v1607_v31 = vpop.permute.xlu1 %1606 }
 0x54f   :  { %v5045_v42 = vpop.f32.mrf.mxu2 }
 0x550   :  { %v2597_v8 = vmax.f32 %v2448_v16, 0.0 }
 0x551   :  { %v5055_v17 = vpop.f32.mrf.mxu0 }
 0x553   :  { %v2281_v46 = vpop.f32.mrf.mxu3 }
 0x554   :  { %v2282_v26 = vadd.f32 %v2281_v46, %v1592_v32  ;;  %3434 = vmatmul.msk.bf16.gmra.mxu2 %vm2154_vm3, %v3382_v6 }
 0x556   :  { %v2450_v62 = vadd.f32 %v2449_v56, %v2282_v26  ;;  %v3282_v26 = vor.u32 %v3549_v60, %v3281_v7 }
 0x557   :  { %v5060_v18 = vpop.f32.mrf.mxu2 }
 0x558   :  { %v2598_v9 = vmax.f32 %v2450_v62, 0.0  ;;  %2323 = vmatmul.bf16.gmra.mxu3 %v3258_v10  ;;  %v5108_v10 = vpop.permute.xlu2 %1656 }
 0x559   :  { %v5070_v2 = vpop.f32.mrf.mxu0 }
 0x55a   :  { %v5053_v58 = vpack.c.bf16 %v2598_v9, %v2597_v8  ;;  %v1617_v8 = vpop.permute.xlu0 %1616  ;;  %v1622_v9 = vpop.permute.xlu1 %1621 }
 0x55b   :  { %v2284_v50 = vpop.f32.mrf.mxu3 }
 0x55c   :  { %v2285_v52 = vadd.f32 %v2284_v50, %v1597_v55  ;;  %v3406_v55 = vor.u32 %v3578_v37, %v3403_v19 }
 0x55e   :  { %v5058_v56 = vadd.f32 %v2452_v25, %v2285_v52  ;;  %v3387_v25 = vld [vmem:[%s5425_s5 + $0x1c8] sm:$0xf0] }
 0x55f   :  { %v5072_v44 = vpop.f32.mrf.mxu2  ;;  %v3390_v30 = vor.u32 %v3574_v38, %v3387_v25  ;;  %v3551_v38 = vld [vmem:[%s5425_s5 + $0x104] sm:$0xf0] }
 0x560   :  { %v5121_v21 = vpop.permute.xlu2 %1696 }
 0x561   :  { %v2464_v33 = vpop.f32.mrf.mxu0 }
 0x562   :  { %v1632_v25 = vpop.permute.xlu0 %1631  ;;  %v1637_v54 = vpop.permute.xlu1 %1636 }
 0x563   :  { %v5068_v12 = vpop.f32.mrf.mxu3 }
 0x564   :  { %3435 = vmatmul.msk.bf16.gmra.mxu2 %vm2154_vm3, %v3390_v30 }
 0x567   :  { %v5081_v34 = vpop.f32.mrf.mxu2 }
 0x568   :  { %2328 = vmatmul.bf16.gmra.mxu3 %v3266_v53  ;;  %5468 = vst [vmem:[#allocation11_spill] sm:$0xff] %v5081_v34  ;;  %v3289_v53 = vld [vmem:[%s5425_s5 + $0x100] sm:$0xf]  ;;  %v2287_v34 = vadd.f32 %v5068_v12, %v1602_v5 }
 0x569   :  { %v2467_v51 = vpop.f32.mrf.mxu0 }
 0x56b   :  { %v2289_v4 = vpop.f32.mrf.mxu3 }
 0x56f   :  { %v5089_v45 = vpop.f32.mrf.mxu2 }
 0x570   :  { %5469 = vst [vmem:[#allocation6_spill] sm:$0xff] %v5089_v45 }
 0x571   :  { %v2469_v46 = vpop.f32.mrf.mxu0 }
 0x573   :  { %v2291_v24 = vpop.f32.mrf.mxu3 }
 0x574   :  { %3436 = vmatmul.msk.bf16.gmra.mxu2 %vm2154_vm3, %v3398_v41  ;;  %v3290_v41 = vor.u32 %v3551_v38, %v3289_v53  ;;  %v2292_v7 = vadd.f32 %v2291_v24, %v1612_v63 }
 0x577   :  { %v5100_v16 = vpop.f32.mrf.mxu2 }
 0x578   :  { %2333 = vmatmul.bf16.gmra.mxu3 %v3274_v23  ;;  %v2654_v23 = vld [vmem:[%s5427_s7] sm:$0xf] }
 0x579   :  { %v2472_v50 = vpop.f32.mrf.mxu0  ;;  %2695 = vst [vmem:[#allocation1] ss:$9 sm:$0xff] %v2654_v23 }
 0x57b   :  { %v2294_v35 = vpop.f32.mrf.mxu3 }
 0x57c   :  { %v2295_v47 = vadd.f32 %v2294_v35, %v1617_v8  ;;  %v2460_v35 = vadd.f32 %v5055_v17, %v2292_v7  ;;  %v3297_v17 = vld [vmem:[%s5425_s5 + $0x110] sm:$0xf] }
 0x57f   :  { %v5110_v62 = vpop.f32.mrf.mxu2 }
 0x581   :  { %v2474_v37 = vpop.f32.mrf.mxu0 }
 0x583   :  { %v2296_v32 = vpop.f32.mrf.mxu3 }
 0x584   :  { %3437 = vmatmul.msk.bf16.gmra.mxu2 %vm2154_vm3, %v3406_v55  ;;  %v2297_v30 = vadd.f32 %v2296_v32, %v1622_v9  ;;  %v2290_v55 = vadd.f32 %v2289_v4, %v1607_v31  ;;  %v2463_v32 = vadd.f32 %v5070_v2, %v2295_v47  ;;  %v1652_v4 = vpop.permute.xlu1 %1651  ;;  %v2455_v2 = vadd.f32 %v5022_v14, %v2287_v34 }
 0x585   :  { %v2602_v31 = vmax.f32 %v2460_v35, 0.0  ;;  %v2599_v14 = vmax.f32 %v5058_v56, 0.0  ;;  %v3305_v35 = vld [vmem:[%s5425_s5 + $0x120] sm:$0xf] }
 0x586   :  { %v2465_v60 = vadd.f32 %v2464_v33, %v2297_v30  ;;  %v2458_v33 = vadd.f32 %v5043_v20, %v2290_v55  ;;  %v2603_v24 = vmax.f32 %v2463_v32, 0.0  ;;  %v3553_v20 = vld [vmem:[%s5425_s5 + $0x114] sm:$0xf0]  ;;  %v2600_v30 = vmax.f32 %v2455_v2, 0.0 }
 0x587   :  { %v5119_v52 = vpop.f32.mrf.mxu2 }
 0x588   :  { %2338 = vmatmul.bf16.gmra.mxu3 %v3282_v26  ;;  %v2601_v12 = vmax.f32 %v2458_v33, 0.0  ;;  %v2659_v47 = vpack.c.bf16 %v2600_v30, %v2599_v14 }
 0x589   :  { %v2477_v5 = vpop.f32.mrf.mxu0 }
 0x58b   :  { %v2299_v6 = vpop.f32.mrf.mxu3 }
 0x58c   :  { %v2300_v22 = vadd.f32 %v2299_v6, %v1627_v48 }
 0x58e   :  { %v2468_v48 = vadd.f32 %v2467_v51, %v2300_v22  ;;  %v2604_v51 = vmax.f32 %v2465_v60, 0.0  ;;  %v5137_v22 = vpop.permute.xlu2 %1691 }
 0x58f   :  { %v5132_v19 = vpop.f32.mrf.mxu2 }
 0x590   :  { %v2605_v9 = vmax.f32 %v2468_v48, 0.0  ;;  %v2661_v53 = vpack.c.bf16 %v2604_v51, %v2603_v24  ;;  %v3555_v51 = vld [vmem:[%s5425_s5 + $0x124] sm:$0xf0] }
 0x591   :  { %v2479_v32 = vpop.f32.mrf.mxu0 }
 0x593   :  { %v2301_v28 = vpop.f32.mrf.mxu3 }
 0x594   :  { %v2302_v15 = vadd.f32 %v2301_v28, %v1632_v25 }
 0x596   :  { %v2470_v26 = vadd.f32 %v2469_v46, %v2302_v15  ;;  %v5151_v23 = vpop.permute.xlu2 %1676  ;;  %v5153_v15 = vpop.permute.xlu1 %1711 }
 0x597   :  { %v5141_v25 = vpop.f32.mrf.mxu2 }
 0x598   :  { %v2606_v6 = vmax.f32 %v2470_v26, 0.0  ;;  %2343 = vmatmul.bf16.gmra.mxu3 %v3290_v41  ;;  %v1647_v26 = vpop.permute.xlu0 %1646 }
 0x599   :  { %v2482_v24 = vpop.f32.mrf.mxu0 }
 0x59a   :  { %v2662_v8 = vpack.c.bf16 %v2606_v6, %v2605_v9 }
 0x59b   :  { %v2304_v63 = vpop.f32.mrf.mxu3 }
 0x59c   :  { %v2305_v46 = vadd.f32 %v2304_v63, %v1637_v54  ;;  %2710 = vmatpush.bf16.msra.mxu2 %v2662_v8  ;;  %v2660_v54 = vpack.c.bf16 %v2602_v31, %v2601_v12  ;;  %v2696_v31 = vld [vmem:[#allocation1] sm:$0xff] }
 0x59e   :  { %v2473_v38 = vadd.f32 %v2472_v50, %v2305_v46  ;;  %v3298_v50 = vor.u32 %v3553_v20, %v3297_v17  ;;  %v5160_v6 = vpop.permute.xlu2 %1781 }
 0x59f   :  { %v5155_v60 = vpop.f32.mrf.mxu2 }
 0x5a0   :  { %2711 = vmatpush.bf16.msra.mxu2 %v2661_v53  ;;  %v2607_v41 = vmax.f32 %v2473_v38, 0.0 }
 0x5a3   :  { %v2306_v28 = vpop.f32.mrf.mxu3 }
 0x5a4   :  { %v2307_v34 = vadd.f32 %v2306_v28, %v5098_v27  ;;  %2712 = vmatpush.bf16.msra.mxu2 %v2660_v54 }
 0x5a6   :  { %v2475_v48 = vadd.f32 %v2474_v37, %v2307_v34  ;;  %v5163_v37 = vpop.permute.xlu1 %1686  ;;  %v1672_v53 = vpop.permute.xlu2 %1671 }
 0x5a7   :  { %v5171_v8 = vpop.f32.mrf.mxu2 }
 0x5a8   :  { %v2608_v7 = vmax.f32 %v2475_v48, 0.0  ;;  %2348 = vmatmul.bf16.gmra.mxu3 %v3298_v50  ;;  %2713 = vmatpush.bf16.msra.mxu2 %v2659_v47  ;;  %5470 = vst [vmem:[#allocation15_spill] sm:$0xff] %v5171_v8 }
 0x5aa   :  { %v5157_v55 = vpack.c.bf16 %v2608_v7, %v2607_v41 }
 0x5ab   :  { %v2309_v56 = vpop.f32.mrf.mxu3 }
 0x5ac   :  { %v2310_v27 = vadd.f32 %v2309_v56, %v1647_v26  ;;  %2714 = vmatpush.bf16.msra.mxu2 %v5053_v58  ;;  %v3306_v58 = vor.u32 %v3555_v51, %v3305_v35  ;;  %v1707_v26 = vpop.permute.xlu0 %1706  ;;  %v3321_v51 = vld [vmem:[%s5425_s5 + $0x140] sm:$0xf] }
 0x5ae   :  { %v2478_v9 = vadd.f32 %v2477_v5, %v2310_v27  ;;  %v5177_v12 = vpop.permute.xlu1 %1791  ;;  %v3313_v5 = vld [vmem:[%s5425_s5 + $0x130] sm:$0xf]  ;;  %v1662_v30 = vpop.permute.xlu2 %1661 }
 0x5af   :  { %v5179_v20 = vpop.f32.mrf.mxu2 }
 0x5b0   :  { %2715 = vmatpush.bf16.msra.mxu2 %v5032_v61  ;;  %v2609_v61 = vmax.f32 %v2478_v9, 0.0  ;;  %5471 = vst [vmem:[#allocation17_spill] sm:$0xff] %v5179_v20 }
 0x5b3   :  { %v2311_v63 = vpop.f32.mrf.mxu3 }
 0x5b4   :  { %v2312_v33 = vadd.f32 %v2311_v63, %v1652_v4  ;;  %2716 = vmatpush.bf16.msra.mxu2 %v5004_v39  ;;  %v2484_v4 = vpop.f32.mrf.mxu0  ;;  %v3559_v63 = vld [vmem:[%s5425_s5 + $0x144] sm:$0xf0] }
 0x5b6   :  { %v2480_v46 = vadd.f32 %v2479_v32, %v2312_v33  ;;  %v5188_v50 = vpop.permute.xlu1 %1776 }
 0x5b7   :  { %v5190_v48 = vpop.f32.mrf.mxu2 }
 0x5b8   :  { %v2610_v2 = vmax.f32 %v2480_v46, 0.0  ;;  %2353 = vmatmul.bf16.gmra.mxu3 %v3306_v58  ;;  %2717 = vmatpush.bf16.msra.mxu2 %v4978_v13  ;;  %v3557_v13 = vld [vmem:[%s5425_s5 + $0x134] sm:$0xf0]  ;;  %5472 = vst [vmem:[#allocation24_spill] sm:$0xff] %v5190_v48 }
 0x5b9   :  { %v3314_v34 = vor.u32 %v3557_v13, %v3313_v5 }
 0x5ba   :  { %v5175_v38 = vpack.c.bf16 %v2610_v2, %v2609_v61  ;;  %v3322_v2 = vor.u32 %v3559_v63, %v3321_v51  ;;  %v3563_v51 = vld [vmem:[%s5425_s5 + $0x164] sm:$0xf0] }
 0x5bb   :  { %v2314_v17 = vpop.f32.mrf.mxu3  ;;  %2718 = vmatmul.bf16.vlgmr.msra.gmra.mxu2 %v2696_v31 }
 0x5bc   :  { %v2315_v39 = vadd.f32 %v2314_v17, %v5108_v10  ;;  %v2487_v7 = vpop.f32.mrf.mxu0 }
 0x5be   :  { %v2483_v28 = vadd.f32 %v2482_v24, %v2315_v39  ;;  %v1667_v27 = vpop.permute.xlu1 %1666  ;;  %v1702_v24 = vpop.permute.xlu0 %1701 }
 0x5bf   :  { %v5194_v35 = vpop.f32.mrf.mxu2 }
 0x5c0   :  { %v2611_v41 = vmax.f32 %v2483_v28, 0.0  ;;  %5473 = vst [vmem:[#allocation7_spill] sm:$0xff] %v5194_v35 }
 0x5c3   :  { %v2316_v54 = vpop.f32.mrf.mxu3 }
 0x5c4   :  { %v2317_v14 = vadd.f32 %v2316_v54, %v1662_v30  ;;  %v2489_v58 = vpop.f32.mrf.mxu0  ;;  %v3329_v54 = vld [vmem:[%s5425_s5 + $0x150] sm:$0xf] }
 0x5c6   :  { %v2485_v47 = vadd.f32 %v2484_v4, %v2317_v14  ;;  %v5208_v30 = vpop.permute.xlu0 %1786  ;;  %v5216_v28 = vpop.permute.xlu1 %1771 }
 0x5c7   :  { %v5204_v5 = vpop.f32.mrf.mxu2 }
 0x5c8   :  { %v2612_v10 = vmax.f32 %v2485_v47, 0.0  ;;  %2358 = vmatmul.bf16.gmra.mxu3 %v3314_v34  ;;  %5474 = vst [vmem:[#allocation18_spill] sm:$0xff] %v5204_v5 }
 0x5ca   :  { %v5192_v56 = vpack.c.bf16 %v2612_v10, %v2611_v41 }
 0x5cb   :  { %v2319_v32 = vpop.f32.mrf.mxu3 }
 0x5cc   :  { %v2320_v9 = vadd.f32 %v2319_v32, %v1667_v27  ;;  %v5224_v27 = vpop.permute.xlu2 %1856  ;;  %v2492_v35 = vpop.f32.mrf.mxu0 }
 0x5cd   :  { %5477 = vst [vmem:[#allocation20_spill] sm:$0xff] %v5224_v27 }
 0x5ce   :  { %v2488_v46 = vadd.f32 %v2487_v7, %v2320_v9  ;;  %v1682_v41 = vpop.permute.xlu0 %1681  ;;  %v5220_v7 = vpop.permute.xlu1 %1761  ;;  %v3337_v9 = vld [vmem:[%s5425_s5 + $0x160] sm:$0xf] }
 0x5cf   :  { %v5218_v47 = vpop.f32.mrf.mxu2 }
 0x5d0   :  { %v2613_v17 = vmax.f32 %v2488_v46, 0.0  ;;  %5475 = vst [vmem:[#allocation12_spill] sm:$0xff] %v5218_v47 }
 0x5d3   :  { %v2321_v33 = vpop.f32.mrf.mxu3 }
 0x5d4   :  { %v2322_v61 = vadd.f32 %v2321_v33, %v1672_v53  ;;  %v3561_v53 = vld [vmem:[%s5425_s5 + $0x154] sm:$0xf0] }
 0x5d5   :  { %v3330_v34 = vor.u32 %v3561_v53, %v3329_v54  ;;  %v3345_v54 = vld [vmem:[%s5425_s5 + $0x170] sm:$0xf]  ;;  %v3565_v53 = vld [vmem:[%s5425_s5 + $0x174] sm:$0xf0] }
 0x5d6   :  { %v2490_v31 = vadd.f32 %v2489_v58, %v2322_v61  ;;  %v5232_v63 = vpop.permute.xlu0 %1866  ;;  %v3338_v58 = vor.u32 %v3563_v51, %v3337_v9  ;;  %v5234_v46 = vpop.permute.xlu1 %1746  ;;  %v3346_v51 = vor.u32 %v3565_v53, %v3345_v54  ;;  %v3353_v54 = vld [vmem:[%s5425_s5 + $0x180] sm:$0xf]  ;;  %v3567_v53 = vld [vmem:[%s5425_s5 + $0x184] sm:$0xf0] }
 0x5d7   :  { %v5222_v32 = vpop.f32.mrf.mxu2  ;;  %5478 = vst [vmem:[#allocation21_spill] sm:$0xff] %v5232_v63  ;;  %v3354_v48 = vor.u32 %v3567_v53, %v3353_v54 }
 0x5d8   :  { %v2614_v4 = vmax.f32 %v2490_v31, 0.0  ;;  %2363 = vmatmul.bf16.gmra.mxu3 %v3322_v2  ;;  %5476 = vst [vmem:[#allocation8_spill] sm:$0xff] %v5222_v32  ;;  %v5238_v2 = vpop.permute.xlu2 %1751 }
 0x5da   :  { %v5202_v39 = vpack.c.bf16 %v2614_v4, %v2613_v17 }
 0x5db   :  { %v5206_v13 = vpop.f32.mrf.mxu3 }
 0x5de   :  { %v5240_v17 = vpop.permute.xlu0 %1766  ;;  %v5242_v4 = vpop.permute.xlu1 %1851 }
 0x5df   :  { %v5236_v61 = vpop.f32.mrf.mxu2  ;;  %5480 = vst [vmem:[#allocation9_spill] sm:$0xff] %v5242_v4 }
 0x5e0   :  { %5479 = vst [vmem:[#allocation16_spill] sm:$0xff] %v5236_v61 }
 0x5e3   :  { %v2326_v14 = vpop.f32.mrf.mxu3 }
 0x5e6   :  { %v5254_v27 = vpop.permute.xlu0 %1756  ;;  %v5256_v63 = vpop.permute.xlu1 %1836 }
 0x5e7   :  { %5482 = vst [vmem:[#allocation19_spill] sm:$0xff] %v5256_v63 }
 0x5e8   :  { %2368 = vmatmul.bf16.gmra.mxu3 %v3330_v34  ;;  %v5250_v34 = vpop.f32.mrf.mxu2 }
 0x5e9   :  { %5481 = vst [vmem:[#allocation22_spill] sm:$0xff] %v5250_v34 }
 0x5eb   :  { %v2329_v10 = vpop.f32.mrf.mxu3 }
 0x5ec   :  { %v2330_v45 = vadd.f32 %v2329_v10, %v5163_v37 }
 0x5ee   :  { %v5262_v47 = vpop.permute.xlu0 %1861  ;;  %v2498_v37 = vadd.f32 %v4913_v49, %v2330_v45  ;;  %v3569_v49 = vld [vmem:[%s5425_s5 + $0x194] sm:$0xf0] }
 0x5ef   :  { %5485 = vst [vmem:[#allocation13_spill] sm:$0xff] %v5262_v47  ;;  %v1732_v47 = vpop.permute.xlu1 %1731 }
 0x5f0   :  { %v5258_v61 = vpop.f32.mrf.mxu2 }
 0x5f1   :  { %5483 = vst [vmem:[#allocation10_spill] sm:$0xff] %v5258_v61 }
 0x5f3   :  { %v2331_v33 = vpop.f32.mrf.mxu3 }
 0x5f8   :  { %2373 = vmatmul.bf16.gmra.mxu3 %v3338_v58  ;;  %v5252_v58 = vpop.permute.xlu2 %1736  ;;  %v5276_v8 = vpop.f32.mrf.mxu2 }
 0x5fb   :  { %v2334_v31 = vpop.f32.mrf.mxu3 }
 0x5fc   :  { %v2335_v63 = vadd.f32 %v2334_v31, %v5121_v21  ;;  %v2494_v31 = vpop.f32.mrf.mxu0 }
 0x600   :  { %v5260_v32 = vpop.permute.xlu2 %1841 }
 0x601   :  { %5484 = vst [vmem:[#allocation23_spill] sm:$0xff] %v5260_v32 }
 0x603   :  { %v2336_v9 = vpop.f32.mrf.mxu3 }
 0x608   :  { %2378 = vmatmul.bf16.gmra.mxu3 %v3346_v51  ;;  %v2337_v51 = vadd.f32 %v2336_v9, %v1702_v24  ;;  %v2503_v24 = vadd.f32 %v4937_v11, %v2335_v63  ;;  %v1717_v63 = vpop.permute.xlu1 %1716 }
 0x60a   :  { %v2619_v11 = vmax.f32 %v2503_v24, 0.0 }
 0x60b   :  { %v2339_v4 = vpop.f32.mrf.mxu3 }
 0x60c   :  { %v2340_v5 = vadd.f32 %v2339_v4, %v1707_v26  ;;  %v2332_v26 = vadd.f32 %v2331_v33, %v5137_v22  ;;  %v2505_v4 = vadd.f32 %v4946_v29, %v2337_v51 }
 0x60e   :  { %v2508_v61 = vadd.f32 %v4961_v1, %v2340_v5  ;;  %v5280_v1 = vpop.permute.xlu2 %1826  ;;  %v2327_v5 = vadd.f32 %v2326_v14, %v1682_v41  ;;  %v2500_v22 = vadd.f32 %v4922_v43, %v2332_v26  ;;  %v2620_v33 = vmax.f32 %v2505_v4, 0.0  ;;  %v5288_v43 = vpop.f32.mrf.mxu2  ;;  %v3361_v41 = vld [vmem:[%s5425_s5 + $0x190] sm:$0xf] }
 0x60f   :  { %v3362_v26 = vor.u32 %v3569_v49, %v3361_v41 }
 0x610   :  { %v2621_v9 = vmax.f32 %v2508_v61, 0.0  ;;  %v2669_v10 = vpack.c.bf16 %v2620_v33, %v2619_v11 }
 0x613   :  { %v2341_v34 = vpop.f32.mrf.mxu3 }
 0x614   :  { %v2342_v32 = vadd.f32 %v2341_v34, %v5153_v15  ;;  %v5282_v15 = vpop.permute.xlu0 %1846  ;;  %v2617_v34 = vmax.f32 %v2498_v37, 0.0 }
 0x616   :  { %v2510_v20 = vadd.f32 %v4970_v36, %v2342_v32  ;;  %v2325_v32 = vadd.f32 %v5206_v13, %v5151_v23  ;;  %v1722_v13 = vpop.permute.xlu2 %1721 }
 0x618   :  { %v2622_v21 = vmax.f32 %v2510_v20, 0.0  ;;  %2383 = vmatmul.bf16.gmra.mxu3 %v3354_v48  ;;  %v2495_v20 = vadd.f32 %v2494_v31, %v2327_v5  ;;  %v2618_v48 = vmax.f32 %v2500_v22, 0.0  ;;  %v2493_v61 = vadd.f32 %v2492_v35, %v2325_v32  ;;  %v5298_v22 = vpop.f32.mrf.mxu2 }
 0x61a   :  { %v2670_v29 = vpack.c.bf16 %v2622_v21, %v2621_v9  ;;  %v2616_v45 = vmax.f32 %v2495_v20, 0.0  ;;  %v2668_v23 = vpack.c.bf16 %v2618_v48, %v2617_v34  ;;  %v2615_v53 = vmax.f32 %v2493_v61, 0.0 }
 0x61b   :  { %v2344_v36 = vpop.f32.mrf.mxu3 }
 0x61c   :  { %2723 = vmatpush.bf16.msra.mxu1 %v2670_v29  ;;  %v2345_v14 = vadd.f32 %v2344_v36, %v1717_v63  ;;  %v1742_v4 = vpop.permute.xlu0 %1741  ;;  %v2667_v24 = vpack.c.bf16 %v2616_v45, %v2615_v53  ;;  %v3369_v36 = vld [vmem:[%s5425_s5 + $0x1a0] sm:$0xf]  ;;  %v2697_v63 = vld [vmem:[#allocation1 + $0x9] sm:$0xff] }
 0x61e   :  { %v2513_v35 = vadd.f32 %v4987_v3, %v2345_v14 }
 0x620   :  { %2724 = vmatpush.bf16.msra.mxu1 %v2669_v10  ;;  %v2623_v21 = vmax.f32 %v2513_v35, 0.0  ;;  %v5312_v20 = vpop.f32.mrf.mxu2 }
 0x623   :  { %v2346_v54 = vpop.f32.mrf.mxu3 }
 0x624   :  { %v2347_v51 = vadd.f32 %v2346_v54, %v1722_v13  ;;  %2725 = vmatpush.bf16.msra.mxu1 %v2668_v23  ;;  %v1727_v31 = vpop.permute.xlu0 %1726 }
 0x626   :  { %v2515_v9 = vadd.f32 %v4996_v59, %v2347_v51  ;;  %v3571_v59 = vld [vmem:[%s5425_s5 + $0x1a4] sm:$0xf0]  ;;  %v3385_v51 = vld [vmem:[%s5425_s5 + $0x1c0] sm:$0xf] }
 0x628   :  { %v2624_v5 = vmax.f32 %v2515_v9, 0.0  ;;  %2388 = vmatmul.bf16.gmra.mxu3 %v3362_v26  ;;  %2726 = vmatpush.bf16.msra.mxu1 %v2667_v24 }
 0x62a   :  { %v5300_v33 = vpack.c.bf16 %v2624_v5, %v2623_v21 }
 0x62b   :  { %v2349_v29 = vpop.f32.mrf.mxu3 }
 0x62c   :  { %2727 = vmatpush.bf16.msra.mxu1 %v5202_v39  ;;  %v2350_v3 = vadd.f32 %v2349_v29, %v1727_v31  ;;  %v3370_v39 = vor.u32 %v3571_v59, %v3369_v36  ;;  %v3393_v31 = vld [vmem:[%s5425_s5 + $0x1d0] sm:$0xf]  ;;  %v3579_v59 = vld [vmem:[%s5425_s5 + $0x1e4] sm:$0xf0] }
 0x62e   :  { %v2518_v37 = vadd.f32 %v5013_v40, %v2350_v3  ;;  %v3577_v3 = vld [vmem:[%s5425_s5 + $0x1d4] sm:$0xf0] }
 0x62f   :  { %v3394_v36 = vor.u32 %v3577_v3, %v3393_v31 }
 0x630   :  { %2728 = vmatpush.bf16.msra.mxu1 %v5192_v56  ;;  %v2625_v56 = vmax.f32 %v2518_v37, 0.0 }
 0x633   :  { %v2351_v32 = vpop.f32.mrf.mxu3 }
 0x634   :  { %v2352_v11 = vadd.f32 %v2351_v32, %v1732_v47  ;;  %2729 = vmatpush.bf16.msra.mxu1 %v5175_v38  ;;  %v3377_v38 = vld [vmem:[%s5425_s5 + $0x1b0] sm:$0xf] }
 0x636   :  { %v2520_v48 = vadd.f32 %v5024_v57, %v2352_v11  ;;  %v3573_v57 = vld [vmem:[%s5425_s5 + $0x1b4] sm:$0xf0] }
 0x637   :  { %v3378_v49 = vor.u32 %v3573_v57, %v3377_v38 }
 0x638   :  { %v2626_v10 = vmax.f32 %v2520_v48, 0.0  ;;  %2393 = vmatmul.bf16.gmra.mxu3 %v3370_v39  ;;  %2730 = vmatpush.bf16.msra.mxu1 %v5157_v55  ;;  %v1477_v39 = vld [vmem:[%s5425_s5 + $0x1f0] sm:$0x33] }
 0x639   :  { %v2056_v48 = vunpack.c.l.b16 %v1477_v39 }
 0x63a   :  { %v5316_v61 = vpack.c.bf16 %v2626_v10, %v2625_v56 }
 0x63b   :  { %v2354_v34 = vpop.f32.mrf.mxu3  ;;  %2731 = vmatmul.bf16.vlgmr.msra.gmra.mxu1 %v2697_v63  ;;  %v2120_v10 = vpack.c.b16 %v2056_v48, %v2056_v48 }
 0x63c   :  { %v2355_v40 = vadd.f32 %v2354_v34, %v5252_v58  ;;  %v2057_v34 = vunpack.c.h.b16 %v1477_v39 }
 0x63e   :  { %v5318_v14 = vpop.f32.mrf.mxu2  ;;  %v2523_v55 = vadd.f32 %v5035_v0, %v2355_v40  ;;  %v3575_v0 = vld [vmem:[%s5425_s5 + $0x1c4] sm:$0xf0] }
 0x63f   :  { %v3386_v24 = vor.u32 %v3575_v0, %v3385_v51 }
 0x640   :  { %v2627_v13 = vmax.f32 %v2523_v55, 0.0 }
 0x643   :  { %v2356_v47 = vpop.f32.mrf.mxu3 }
 0x644   :  { %v2357_v41 = vadd.f32 %v2356_v47, %v1742_v4  ;;  %v5360_v47 = vpop.permute.xlu0 %1831 }
 0x646   :  { %v2525_v45 = vadd.f32 %v5045_v42, %v2357_v41  ;;  %v2721_v23 = vpop.f32.mrf.mxu2  ;;  %v2121_v41 = vpack.c.b16 %v2057_v34, %v2057_v34 }
 0x647   :  { %v5365_v23 = vpop.permute.xlu1 %1821 }
 0x648   :  { %v2628_v54 = vmax.f32 %v2525_v45, 0.0  ;;  %2398 = vmatmul.bf16.gmra.mxu3 %v3378_v49 }
 0x64a   :  { %v5329_v58 = vpack.c.bf16 %v2628_v54, %v2627_v13 }
 0x64b   :  { %v2359_v53 = vpop.f32.mrf.mxu3 }
 0x64c   :  { %v2360_v35 = vadd.f32 %v2359_v53, %v5234_v46 }
 0x64e   :  { %v2528_v42 = vadd.f32 %v5060_v18, %v2360_v35 }
 0x650   :  { %v2629_v21 = vmax.f32 %v2528_v42, 0.0 }
 0x653   :  { %v2361_v26 = vpop.f32.mrf.mxu3 }
 0x654   :  { %v2362_v4 = vadd.f32 %v2361_v26, %v5238_v2 }
 0x656   :  { %v2530_v9 = vadd.f32 %v5072_v44, %v2362_v4  ;;  %v3401_v44 = vld [vmem:[%s5425_s5 + $0x1e0] sm:$0xf]  ;;  %s3630_s5 = smov [#allocation3]  }
 0x657   :  { %v3402_v37 = vor.u32 %v3579_v59, %v3401_v44  ;;  %v5489_v59 = vld [vmem:[#allocation17_spill] sm:$0xff]  ;;  %s2791_s7 = sshll.u32 %s3630_s5, 4  ;;  %s2792_s7 = int_to_ptr.vmem [resolvable:$true] %s2791_s7 }
 0x658   :  { %v2630_v5 = vmax.f32 %v2530_v9, 0.0  ;;  %2403 = vmatmul.bf16.gmra.mxu3 %v3386_v24 }
 0x65a   :  { %v5341_v46 = vpack.c.bf16 %v2630_v5, %v2629_v21  ;;  %v1797_v21 = vpop.permute.xlu1 %1796  ;;  %v5487_v5 = vld [vmem:[#allocation11_spill] sm:$0xff] }
 0x65b   :  { %v2364_v29 = vpop.f32.mrf.mxu3 }
 0x663   :  { %v2366_v18 = vpop.f32.mrf.mxu3 }
 0x668   :  { %2408 = vmatmul.bf16.gmra.mxu3 %v3394_v36 }
 0x66b   :  { %v2369_v2 = vpop.f32.mrf.mxu3 }
 0x673   :  { %v2371_v32 = vpop.f32.mrf.mxu3 }
 0x674   :  { %v2372_v13 = vadd.f32 %v2371_v32, %v5216_v28 }
 0x678   :  { %2413 = vmatmul.bf16.gmra.mxu3 %v3402_v37 }
 0x67b   :  { %v2374_v11 = vpop.f32.mrf.mxu3 }
 0x67c   :  { %v2375_v55 = vadd.f32 %v2374_v11, %v5188_v50  ;;  %v1807_v50 = vpop.permute.xlu2 %1806 }
 0x67e   :  { %v2543_v53 = vadd.f32 %v5119_v52, %v2375_v55  ;;  %v5486_v52 = vld [vmem:[#allocation6_spill] sm:$0xff] }
 0x680   :  { %v2635_v42 = vmax.f32 %v2543_v53, 0.0 }
 0x683   :  { %v2376_v56 = vpop.f32.mrf.mxu3 }
 0x684   :  { %v2377_v38 = vadd.f32 %v2376_v56, %v5160_v6  ;;  %v2370_v6 = vadd.f32 %v2369_v2, %v5240_v17  ;;  %v1817_v17 = vpop.permute.xlu0 %1816  ;;  %v1802_v36 = vpop.permute.xlu2 %1801 }
 0x686   :  { %v2545_v54 = vadd.f32 %v5132_v19, %v2377_v38  ;;  %v2365_v19 = vadd.f32 %v2364_v29, %v5254_v27  ;;  %v5488_v29 = vld [vmem:[#allocation15_spill] sm:$0xff]  ;;  %v5490_v38 = vld [vmem:[#allocation24_spill] sm:$0xff] }
 0x688   :  { %2418 = vmatmul.bf16.gmra.mxu3 %v2120_v10  ;;  %v2636_v0 = vmax.f32 %v2545_v54, 0.0  ;;  %v2533_v31 = vadd.f32 %v5487_v5, %v2365_v19 }
 0x68a   :  { %v2677_v9 = vpack.c.bf16 %v2636_v0, %v2635_v42  ;;  %v2631_v27 = vmax.f32 %v2533_v31, 0.0 }
 0x68b   :  { %v2379_v63 = vpop.f32.mrf.mxu3 }
 0x68c   :  { %v2380_v40 = vadd.f32 %v2379_v63, %v5208_v30  ;;  %v1812_v11 = vpop.permute.xlu0 %1811 }
 0x68e   :  { %v2548_v49 = vadd.f32 %v5141_v25, %v2380_v40  ;;  %v2367_v25 = vadd.f32 %v2366_v18, %v5220_v7 }
 0x690   :  { %v2637_v35 = vmax.f32 %v2548_v49, 0.0  ;;  %v2535_v4 = vadd.f32 %v5486_v52, %v2367_v25  ;;  %v5491_v49 = vld [vmem:[#allocation7_spill] sm:$0xff]  ;;  %v5492_v25 = vld [vmem:[#allocation18_spill] sm:$0xff] }
 0x693   :  { %v2381_v57 = vpop.f32.mrf.mxu3 }
 0x694   :  { %v2382_v45 = vadd.f32 %v2381_v57, %v5177_v12  ;;  %v2540_v12 = vadd.f32 %v5110_v62, %v2372_v13  ;;  %v2632_v62 = vmax.f32 %v2535_v4, 0.0  ;;  %v2691_v34 = vpop.permute.xlu0 %2690  ;;  %v5494_v4 = vld [vmem:[#allocation8_spill] sm:$0xff] }
 0x696   :  { %v2550_v30 = vadd.f32 %v5155_v60, %v2382_v45  ;;  %v2538_v60 = vadd.f32 %v5100_v16, %v2370_v6  ;;  %v2634_v24 = vmax.f32 %v2540_v12, 0.0  ;;  %v2675_v37 = vpack.c.bf16 %v2632_v62, %v2631_v27  ;;  %v5498_v27 = vld [vmem:[#allocation23_spill] sm:$0xff] }
 0x698   :  { %v2638_v51 = vmax.f32 %v2550_v30, 0.0  ;;  %3438 = vmatmul.msk.bf16.vlgmr.msra.gmra.mxu3 %vm2154_vm3, %v2121_v41  ;;  %v2633_v7 = vmax.f32 %v2538_v60, 0.0  ;;  %v2693_v41 = vperm.slane %v2691_v34, 0 }
 0x69a   :  { %v2678_v26 = vpack.c.bf16 %v2638_v51, %v2637_v35  ;;  %v2676_v18 = vpack.c.bf16 %v2634_v24, %v2633_v7  ;;  %v2720_v13 = vadd.f32 %v5318_v14, %v2693_v41  ;;  %v5493_v14 = vld [vmem:[#allocation12_spill] sm:$0xff] }
 0x69b   :  { %v2384_v28 = vpop.f32.mrf.mxu3 }
 0x69c   :  { %2736 = vmatpush.bf16.msrb.mxu2 %v2678_v26  ;;  %v2385_v3 = vadd.f32 %v2384_v28, %v1797_v21 }
 0x69e   :  { %v2553_v16 = vadd.f32 %v5488_v29, %v2385_v3 }
 0x6a0   :  { %2737 = vmatpush.bf16.msrb.mxu2 %v2677_v9  ;;  %v2639_v39 = vmax.f32 %v2553_v16, 0.0  ;;  %v5499_v16 = vld [vmem:[#allocation10_spill] sm:$0xff] }
 0x6a3   :  { %v2386_v2 = vpop.f32.mrf.mxu3 }
 0x6a4   :  { %v2387_v44 = vadd.f32 %v2386_v2, %v1802_v36  ;;  %2738 = vmatpush.bf16.msrb.mxu2 %v2676_v18  ;;  %v5497_v36 = vld [vmem:[#allocation22_spill] sm:$0xff] }
 0x6a6   :  { %v2555_v32 = vadd.f32 %v5489_v59, %v2387_v44 }
 0x6a8   :  { %v2640_v48 = vmax.f32 %v2555_v32, 0.0  ;;  %2739 = vmatpush.bf16.msrb.mxu2 %v2675_v37 }
 0x6aa   :  { %v5381_v56 = vpack.c.bf16 %v2640_v48, %v2639_v39 }
 0x6ab   :  { %v2389_v10 = vpop.f32.mrf.mxu3 }
 0x6ac   :  { %2740 = vmatpush.bf16.msrb.mxu2 %v5341_v46  ;;  %v2390_v63 = vadd.f32 %v2389_v10, %v1807_v50  ;;  %v2698_v46 = vld [vmem:[#allocation1 + $0x12] sm:$0xff] }
 0x6ae   :  { %v2558_v57 = vadd.f32 %v5490_v38, %v2390_v63  ;;  %v5500_v63 = vld [vmem:[#allocation13_spill] sm:$0xff] }
 0x6b0   :  { %2741 = vmatpush.bf16.msrb.mxu2 %v5329_v58  ;;  %v2641_v54 = vmax.f32 %v2558_v57, 0.0  ;;  %v5502_v57 = vld [vmem:[#allocation20_spill] sm:$0xff] }
 0x6b3   :  { %v2391_v40 = vpop.f32.mrf.mxu3 }
 0x6b4   :  { %v2392_v55 = vadd.f32 %v2391_v40, %v1812_v11  ;;  %2742 = vmatpush.bf16.msrb.mxu2 %v5316_v61  ;;  %v5501_v40 = vld [vmem:[#allocation21_spill] sm:$0xff] }
 0x6b6   :  { %v2560_v45 = vadd.f32 %v5491_v49, %v2392_v55 }
 0x6b8   :  { %v2642_v30 = vmax.f32 %v2560_v45, 0.0  ;;  %v2732_v6 = vpop.f32.mrf.mxu1  ;;  %2743 = vmatpush.bf16.msrb.mxu2 %v5300_v33  ;;  %v5503_v45 = vld [vmem:[#allocation9_spill] sm:$0xff] }
 0x6b9   :  { %v5390_v53 = vadd.f32 %v2732_v6, %v2720_v13 }
 0x6ba   :  { %v5392_v58 = vpack.c.bf16 %v2642_v30, %v2641_v54 }
 0x6bb   :  { %v2394_v35 = vpop.f32.mrf.mxu3  ;;  %2744 = vmatmul.bf16.vlgmr.msrb.gmra.mxu2 %v2698_v46 }
 0x6bc   :  { %v2395_v51 = vadd.f32 %v2394_v35, %v1817_v17  ;;  %v5495_v17 = vld [vmem:[#allocation16_spill] sm:$0xff] }
 0x6be   :  { %v2563_v12 = vadd.f32 %v5492_v25, %v2395_v51 }
 0x6c0   :  { %v2734_v50 = vpop.f32.mrf.mxu1  ;;  %v2643_v28 = vmax.f32 %v2563_v12, 0.0 }
 0x6c3   :  { %v2396_v61 = vpop.f32.mrf.mxu3 }
 0x6c4   :  { %v2397_v0 = vadd.f32 %v2396_v61, %v5365_v23  ;;  %v5496_v23 = vld [vmem:[#allocation19_spill] sm:$0xff] }
 0x6c6   :  { %v2565_v26 = vadd.f32 %v5493_v14, %v2397_v0 }
 0x6c8   :  { %v2644_v19 = vmax.f32 %v2565_v26, 0.0 }
 0x6ca   :  { %v2681_v60 = vpack.c.bf16 %v2644_v19, %v2643_v28 }
 0x6cb   :  { %v2399_v33 = vpop.f32.mrf.mxu3 }
 0x6cc   :  { %v2400_v42 = vadd.f32 %v2399_v33, %v5280_v1 }
 0x6ce   :  { %v2568_v24 = vadd.f32 %v5494_v4, %v2400_v42 }
 0x6d0   :  { %v2645_v5 = vmax.f32 %v2568_v24, 0.0 }
 0x6d3   :  { %v2401_v52 = vpop.f32.mrf.mxu3 }
 0x6d4   :  { %v2402_v9 = vadd.f32 %v2401_v52, %v5360_v47 }
 0x6d6   :  { %v2570_v21 = vadd.f32 %v5495_v17, %v2402_v9 }
 0x6d8   :  { %v2646_v31 = vmax.f32 %v2570_v21, 0.0 }
 0x6da   :  { %v2682_v7 = vpack.c.bf16 %v2646_v31, %v2645_v5 }
 0x6db   :  { %v2404_v3 = vpop.f32.mrf.mxu3 }
 0x6dc   :  { %v2405_v62 = vadd.f32 %v2404_v3, %v5496_v23 }
 0x6de   :  { %v2573_v2 = vadd.f32 %v5497_v36, %v2405_v62 }
 0x6e0   :  { %v2647_v44 = vmax.f32 %v2573_v2, 0.0 }
 0x6e3   :  { %v2406_v18 = vpop.f32.mrf.mxu3 }
 0x6e4   :  { %v2407_v29 = vadd.f32 %v2406_v18, %v5498_v27 }
 0x6e6   :  { %v2575_v1 = vadd.f32 %v5499_v16, %v2407_v29 }
 0x6e8   :  { %v2648_v59 = vmax.f32 %v2575_v1, 0.0 }
 0x6ea   :  { %v2683_v32 = vpack.c.bf16 %v2648_v59, %v2647_v44 }
 0x6eb   :  { %v2409_v37 = vpop.f32.mrf.mxu3 }
 0x6ec   :  { %v2410_v6 = vadd.f32 %v2409_v37, %v5282_v15 }
 0x6ee   :  { %v2578_v25 = vadd.f32 %v5276_v8, %v2410_v6  ;;  %v2699_v8 = vld [vmem:[#allocation1 + $0x1b] sm:$0xff] }
 0x6f0   :  { %v2649_v28 = vmax.f32 %v2578_v25, 0.0 }
 0x6f3   :  { %v2411_v47 = vpop.f32.mrf.mxu3 }
 0x6f4   :  { %v2412_v13 = vadd.f32 %v2411_v47, %v5503_v45 }
 0x6f6   :  { %v2580_v51 = vadd.f32 %v5288_v43, %v2412_v13 }
 0x6f8   :  { %v2650_v14 = vmax.f32 %v2580_v51, 0.0 }
 0x6fb   :  { %v2414_v11 = vpop.f32.mrf.mxu3 }
 0x6fc   :  { %v2415_v55 = vadd.f32 %v2414_v11, %v5502_v57 }
 0x6fe   :  { %v2583_v46 = vadd.f32 %v5298_v22, %v2415_v55 }
 0x700   :  { %v2651_v12 = vmax.f32 %v2583_v46, 0.0 }
 0x703   :  { %v2416_v39 = vpop.f32.mrf.mxu3 }
 0x704   :  { %v2417_v34 = vadd.f32 %v2416_v39, %v5500_v63 }
 0x706   :  { %v2585_v54 = vadd.f32 %v5312_v20, %v2417_v34  ;;  %v2684_v20 = vpack.c.bf16 %v2650_v14, %v2649_v28 }
 0x708   :  { %v2652_v50 = vmax.f32 %v2585_v54, 0.0 }
 0x70a   :  { %v2685_v26 = vpack.c.bf16 %v2652_v50, %v2651_v12 }
 0x70b   :  { %v2419_v48 = vpop.f32.mrf.mxu3 }
 0x70c   :  { %v2420_v38 = vadd.f32 %v2419_v48, %v5501_v40 }
 0x713   :  { %v2421_v10 = vpop.f32.mrf.mxu3 }
 0x71b   :  { %v2587_v41 = vpop.f32.mrf.mxu3 }
 0x71c   :  { %v2588_v49 = vadd.f32 %v2587_v41, %v2420_v38 }
 0x71e   :  { %v2653_v30 = vmax.f32 %v2588_v49, 0.0 }
 0x720   :  { %v2686_v35 = vpack.c.bf16 %v2653_v30, %v2653_v30 }
 0x722   :  { %v2708_v61 = vsel %vm2706_vm4, %v2686_v35, 0 }
 0x723   :  { %v2589_v0 = vpop.f32.mrf.mxu3  ;;  %2749 = vmatpush.bf16.msrb.mxu1 %v2708_v61 }
 0x727   :  { %2750 = vmatpush.bf16.msrb.mxu1 %v2685_v26 }
 0x72b   :  { %2751 = vmatpush.bf16.msrb.mxu1 %v2684_v20 }
 0x72f   :  { %2752 = vmatpush.bf16.msrb.mxu1 %v2683_v32 }
 0x733   :  { %2753 = vmatpush.bf16.msrb.mxu1 %v2682_v7 }
 0x737   :  { %2754 = vmatpush.bf16.msrb.mxu1 %v2681_v60 }
 0x73b   :  { %2755 = vmatpush.bf16.msrb.mxu1 %v5392_v58 }
 0x73e   :  { %v2745_v15 = vpop.f32.mrf.mxu2 }
 0x73f   :  { %v2746_v43 = vadd.f32 %v2745_v15, %v5390_v53  ;;  %2756 = vmatpush.bf16.msrb.mxu1 %v5381_v56 }
 0x742   :  { %3439 = vmatmul.msk.bf16.vlgmr.msrb.gmra.mxu1 %vm2703_vm5, %v2699_v8 }
 0x746   :  { %v2747_v22 = vpop.f32.mrf.mxu2 }
 0x7bf   :  { %v2758_v19 = vpop.f32.mrf.mxu1 }
 0x7c0   :  { %v2759_v33 = vadd.f32 %v2758_v19, %v2746_v43 }
 0x7c2   :  { %v2762_v42 = vand.u32 2147483647, %v2759_v33  ;;  %vm2766_vm10 = vcmp.ge.f32.partialorder %v2759_v33, 0.0 }
 0x7c4   :  { %v2763_v52 = vsub.f32 0.0, %v2762_v42 }
 0x7c6   :  { %v2764_v4 = vmul.f32 1.442695, %v2763_v52 }
 0x7c7   :  { %v2760_v24 = vpop.f32.mrf.mxu1 }
 0x7c8   :  { %3599 = vpow2.f32 %v2764_v4 }
 0x7ce   :  { %v3600_v9 = vpop.eup %3599 }
 0x7cf   :  { %v2767_v60 = vadd.f32 1.0, %v3600_v9 }
 0x7d1   :  { %3601 = vrcp.f32 %v2767_v60  ;;  %v2779_v53 = vand.u32 2147483648, %v2767_v60  ;;  %v2777_v56 = vand.u32 2147483647, %v2767_v60  ;;  %vm2773_vm7 = vweird.f32 %v2767_v60 }
 0x7d3   :  { %v2780_v7 = vor.u32 1.1754944e-38, %v2779_v53  ;;  %vm2778_vm9 = vcmp.eq.f32.partialorder %v2777_v56, 8.507059e+37 }
 0x7d7   :  { %v3602_v58 = vpop.eup %3601 }
 0x7d8   :  { %v2769_v17 = vmul.f32 %v3602_v58, %v2767_v60  ;;  %vm2774_vm6 = vweird.f32 %v3602_v58 }
 0x7d9   :  { %vm2775_vm8 = vmor %vm2773_vm7, %vm2774_vm6 }
 0x7da   :  { %v2770_v21 = vsub.f32 1.0, %v2769_v17 }
 0x7dc   :  { %v2771_v5 = vmul.f32 %v3602_v58, %v2770_v21 }
 0x7de   :  { %v2772_v31 = vadd.f32 %v3602_v58, %v2771_v5 }
 0x7e0   :  { %v2776_v3 = vsel %vm2775_vm8, %v3602_v58, %v2772_v31 }
 0x7e1   :  { %v2781_v23 = vsel %vm2778_vm9, %v2780_v7, %v2776_v3 }
 0x7e2   :  { %v2783_v62 = vmul.f32 %v3600_v9, %v2781_v23 }
 0x7e4   :  { %v2784_v18 = vsel %vm2766_vm10, %v2781_v23, %v2783_v62 }
 0x7e5   :  { %2785 = vst [vmem:[#allocation3] sm:$0x1] %v2784_v18 }
 0x7e6   :  { %2796 = dma.vmem_to_hbm [thread:$0]  %s2792_s7, 16, %s2794_s3, [#allocation4]  }
 0x7e7   :  { %3627 = dma.done.wait [#allocation4], 16  }
 0x7e8   :  { %3628 = vsyncadd [#allocation4], 4294967280 }
 0x7e9   :  { %2801 = vsyncpa [#allocation4], 1 }

</bundles_post_ra>
